<compile_context>
chip_gen: v6e
topology: v6e:2x2x1
jax: 0.10.0
libtpu: 0.0.40
codegen_flags: <defaults>
</compile_context>

<pallas_src>
import jax
import jax.numpy as jnp
from jax import lax
from jax.experimental import pallas as pl
from jax.experimental.pallas import tpu as pltpu


def _pointer_kernel(x_ref, w_in_ref, b_in_ref, wh2_ref, bh2_ref, wt2_ref, bt2_ref,
                    w12_ref, bbil_ref, emb_ref, out_ref):
    f32 = jnp.float32
    H = wh2_ref.shape[0]
    x = x_ref[...]                                   # (NP, H), compute dtype (bf16)
    cdt = x.dtype

    # Fused head/tail first layer: [h | t] = relu(x @ [wh1 | wt1] + [bh1 | bt1]).
    u = jnp.maximum(
        jnp.dot(x, w_in_ref[...], preferred_element_type=f32) + b_in_ref[...], 0.0)
    h = u[:, :H].astype(cdt)
    t = u[:, H:].astype(cdt)
    head = jnp.tanh(jnp.dot(h, wh2_ref[...], preferred_element_type=f32) + bh2_ref[...])
    tail = jnp.tanh(jnp.dot(t, wt2_ref[...], preferred_element_type=f32) + bt2_ref[...])
    head = head.astype(cdt)
    tail = tail.astype(cdt)

    # Fused bilinear projections: [m | p] = head @ [W1 | W2].
    mp = jnp.dot(head, w12_ref[...], preferred_element_type=f32)     # (NP, H + Dr)
    m = mp[:, :H].astype(cdt)
    p = mp[:, H:].astype(cdt)

    # s1[t, i] = tail[t] . m[i]   (contract last dims -> no explicit transpose)
    s1 = lax.dot_general(tail, m, (((1,), (1,)), ((), ())),
                         preferred_element_type=f32)                  # (NP, NP)
    # q[i, r] = p[i] . emb[r]
    q = lax.dot_general(p, emb_ref[...], (((1,), (1,)), ((), ())),
                        preferred_element_type=f32)                   # (NP, NP)

    # s2[t, i] = q[i, (t - i) mod NP] == q[i, max(t - i, 0)] wherever i <= t.
    # The circular-wrap values (i > t) are overwritten by the -1e10 mask below.
    q_roll = pltpu.roll(q, shift=0, axis=1, stride=1, stride_axis=0)  # q_roll[i, c] = q[i, (c - i) % NP]
    s2 = q_roll.T

    logits = s1 + s2 + bbil_ref[0, 0]                                 # SMEM scalar bias

    NP = out_ref.shape[0]
    ti = lax.broadcasted_iota(jnp.int32, (NP, NP), 0)
    ii = lax.broadcasted_iota(jnp.int32, (NP, NP), 1)
    # i > t masked; padded columns i >= N are always i > t for the rows t < N kept by the
    # wrapper, so no extra padding mask is needed.
    logits = jnp.where(ii > ti, jnp.float32(-1.0e10), logits)

    # Row softmax over all NP rows / columns (f32); wrapper slices [1:N, :N].
    mx = jnp.max(logits, axis=-1, keepdims=True)
    ex = jnp.exp(logits - mx)
    denom = jnp.sum(ex, axis=-1, keepdims=True)
    out_ref[...] = ex * pl.reciprocal(denom, approx=True)


def pairwise_pointer_network(paragraphs, params, *, compute_dtype=jnp.bfloat16):
    """paragraphs: (B, N, H). Returns father_node_logit_scores: (B, N-1, N) in float32."""
    B, N, H = paragraphs.shape
    Dr = params["w2"].shape[1]
    Rmax = params["emb"].shape[0]
    assert Rmax >= N, "max_paragraph_num must cover num_paragraphs (rel-offset table)"
    NP = ((N + 127) // 128) * 128          # lane/sublane-dense padded problem size

    cdt = compute_dtype
    f32 = jnp.float32
    x = jnp.pad(paragraphs.astype(cdt), ((0, 0), (0, NP - N), (0, 0)))            # (B, NP, H)
    w_in = jnp.concatenate([params["wh1"], params["wt1"]], axis=1).astype(cdt)    # (H, 2H)
    b_in = jnp.concatenate([params["bh1"], params["bt1"]], axis=1).astype(f32)    # (1, 2H)
    wh2 = params["wh2"].astype(cdt)
    bh2 = params["bh2"].astype(f32)
    wt2 = params["wt2"].astype(cdt)
    bt2 = params["bt2"].astype(f32)
    w12 = jnp.concatenate([params["w1"], params["w2"]], axis=1).astype(cdt)       # (H, H+Dr)
    bbil = params["bbil"].astype(f32)                                             # (1, 1)
    emb = jnp.pad(params["emb"][:N].astype(cdt), ((0, NP - N), (0, 0)))           # (NP, Dr)

    def full2d(a):
        return pl.BlockSpec(a.shape, lambda b: (0, 0))

    scores = pl.pallas_call(
        _pointer_kernel,
        out_shape=jax.ShapeDtypeStruct((B, NP, NP), f32),
        grid=(B,),
        in_specs=[
            pl.BlockSpec((None, NP, H), lambda b: (b, 0, 0)),      # per-batch (NP, H) slab
            full2d(w_in), full2d(b_in),
            full2d(wh2), full2d(bh2),
            full2d(wt2), full2d(bt2),
            full2d(w12),
            pl.BlockSpec(memory_space=pltpu.MemorySpace.SMEM),     # bilinear bias scalar
            full2d(emb),
        ],
        out_specs=pl.BlockSpec((None, NP, NP), lambda b: (b, 0, 0)),
        compiler_params=pltpu.CompilerParams(dimension_semantics=("parallel",)),
    )(x, w_in, b_in, wh2, bh2, wt2, bt2, w12, bbil, emb)
    return scores[:, 1:N, :N]


def reference(paragraphs, params):
    """Pure-JAX f32 reference mirroring the PyTorch forward (per-batch independent)."""
    x = paragraphs.astype(jnp.float32)
    _, N, _ = x.shape
    head = jnp.tanh(jnp.maximum(x @ params["wh1"] + params["bh1"], 0.0)
                    @ params["wh2"] + params["bh2"])
    tail = jnp.tanh(jnp.maximum(x @ params["wt1"] + params["bt1"], 0.0)
                    @ params["wt2"] + params["bt2"])
    t_idx = jnp.arange(N)[:, None]
    i_idx = jnp.arange(N)[None, :]
    rel = params["emb"][jnp.maximum(t_idx - i_idx, 0)]                 # (N, N, Dr)
    s1 = jnp.einsum("bid,de,bte->bti", head, params["w1"], tail)
    s2 = jnp.einsum("bid,dr,tir->bti", head, params["w2"], rel)
    logits = s1 + s2 + params["bbil"][0, 0]
    mask = jnp.triu(jnp.ones((N, N), jnp.float32), k=1)
    logits = logits + (-1.0e10) * mask[None]
    return jax.nn.softmax(logits[:, 1:, :], axis=-1)


def init_params(key, H, Dr, Rmax):
    ks = jax.random.split(key, 12)

    def dense(k, fan_in, shape):
        return jax.random.normal(k, shape, jnp.float32) / jnp.sqrt(jnp.float32(fan_in))

    return {
        # head_mlp
        "wh1": dense(ks[0], H, (H, H)), "bh1": dense(ks[1], H, (1, H)),
        "wh2": dense(ks[2], H, (H, H)), "bh2": dense(ks[3], H, (1, H)),
        # tail_mlp
        "wt1": dense(ks[4], H, (H, H)), "bt1": dense(ks[5], H, (1, H)),
        "wt2": dense(ks[6], H, (H, H)), "bt2": dense(ks[7], H, (1, H)),
        # nn.Bilinear(H, H + Dr, 1): weight split into tail / relative-position parts
        "w1": dense(ks[8], H + Dr, (H, H)),
        "w2": dense(ks[9], H + Dr, (H, Dr)),
        "bbil": dense(ks[10], H + Dr, (1, 1)),
        # relative position embedding table nn.Embedding(max_paragraph_num, Dr)
        "emb": jax.random.normal(ks[11], (Rmax, Dr), jnp.float32) * 0.1,
    }


if __name__ == "__main__":
    B, N, H = 2, 8, 32          # batch, num_paragraphs, hidden_dim (input_dims)
    Dr, Rmax = 16, 16           # relative_position_encoding_dim, max_paragraph_num

    root = jax.random.PRNGKey(0)
    k_x, k_p = jax.random.split(root)
    paragraphs = jax.random.normal(k_x, (B, N, H), jnp.float32)
    params = init_params(k_p, H, Dr, Rmax)

    out = jax.block_until_ready(pairwise_pointer_network(paragraphs, params))
    ref = jax.block_until_ready(reference(paragraphs, params))

    assert out.shape == (B, N - 1, N)
    # bf16 MXU inputs with f32 accumulation vs. f32 reference -> modest tolerance.
    assert jnp.allclose(out, ref, atol=3e-2, rtol=3e-2), "kernel does not match reference"
    # approx reciprocal in the softmax denominator -> rows sum to 1 within ~1e-3.
    assert jnp.allclose(jnp.sum(out, axis=-1), 1.0, atol=5e-3), "softmax rows must sum to 1"

    print("KERNEL_OK")
</pallas_src>

<mosaic_0001>
module attributes {stable_mosaic.version = 11 : i64} {
  func.func @_pointer_kernel(%arg0: i32, %arg1: memref<1x128x32xbf16, #tpu.memory_space<vmem>>, %arg2: memref<32x64xbf16, #tpu.memory_space<vmem>>, %arg3: memref<1x64xf32, #tpu.memory_space<vmem>>, %arg4: memref<32x32xbf16, #tpu.memory_space<vmem>>, %arg5: memref<1x32xf32, #tpu.memory_space<vmem>>, %arg6: memref<32x32xbf16, #tpu.memory_space<vmem>>, %arg7: memref<1x32xf32, #tpu.memory_space<vmem>>, %arg8: memref<32x48xbf16, #tpu.memory_space<vmem>>, %arg9: memref<1x1xf32, #tpu.memory_space<smem>>, %arg10: memref<128x16xbf16, #tpu.memory_space<vmem>>, %arg11: memref<1x128x128xf32, #tpu.memory_space<vmem>>) attributes {dimension_semantics = [#tpu.dimension_semantics<parallel>], iteration_bounds = array<i64: 2>, scalar_prefetch = 0 : i64, scratch_operands = 0 : i64, tpu.core_type = #tpu.core_type<tc>, window_params = [{transform_indices = @transform_0, window_bounds = array<i64: 1, 128, 32>}, {pipeline_mode = #tpu.pipeline_mode<synchronous>, transform_indices = @transform_1, window_bounds = array<i64: 32, 64>}, {pipeline_mode = #tpu.pipeline_mode<synchronous>, transform_indices = @transform_2, window_bounds = array<i64: 1, 64>}, {pipeline_mode = #tpu.pipeline_mode<synchronous>, transform_indices = @transform_3, window_bounds = array<i64: 32, 32>}, {pipeline_mode = #tpu.pipeline_mode<synchronous>, transform_indices = @transform_4, window_bounds = array<i64: 1, 32>}, {pipeline_mode = #tpu.pipeline_mode<synchronous>, transform_indices = @transform_5, window_bounds = array<i64: 32, 32>}, {pipeline_mode = #tpu.pipeline_mode<synchronous>, transform_indices = @transform_6, window_bounds = array<i64: 1, 32>}, {pipeline_mode = #tpu.pipeline_mode<synchronous>, transform_indices = @transform_7, window_bounds = array<i64: 32, 48>}, {transform_indices = @transform_8, window_bounds = array<i64: 1, 1>}, {pipeline_mode = #tpu.pipeline_mode<synchronous>, transform_indices = @transform_9, window_bounds = array<i64: 128, 16>}, {transform_indices = @transform_10, window_bounds = array<i64: 1, 128, 128>}]} {
    %c0 = arith.constant 0 : index
    %c0_0 = arith.constant 0 : index
    %c0_1 = arith.constant 0 : index
    %0 = vector.load %arg1[%c0, %c0_0, %c0_1] : memref<1x128x32xbf16, #tpu.memory_space<vmem>>, vector<1x128x32xbf16>
    %1 = vector.shape_cast %0 : vector<1x128x32xbf16> to vector<128x32xbf16>
    %c0_2 = arith.constant 0 : index
    %c0_3 = arith.constant 0 : index
    %2 = vector.load %arg2[%c0_2, %c0_3] : memref<32x64xbf16, #tpu.memory_space<vmem>>, vector<32x64xbf16>
    %cst = arith.constant dense<0.000000e+00> : vector<128x64xf32>
    %3 = tpu.matmul %1, %2, %cst {dimension_numbers = #tpu.dot_dimension_numbers<[1], [0], [0], [1], [0, 0, 1, 1], [], []>} : vector<128x32xbf16>, vector<32x64xbf16>, vector<128x64xf32> -> vector<128x64xf32>
    %c0_4 = arith.constant 0 : index
    %c0_5 = arith.constant 0 : index
    %4 = vector.load %arg3[%c0_4, %c0_5] : memref<1x64xf32, #tpu.memory_space<vmem>>, vector<1x64xf32>
    %5 = vector.broadcast %4 : vector<1x64xf32> to vector<128x64xf32>
    %6 = arith.addf %3, %5 : vector<128x64xf32>
    %cst_6 = arith.constant 0.000000e+00 : f32
    %7 = vector.broadcast %cst_6 : f32 to vector<128x64xf32>
    %8 = arith.maximumf %6, %7 : vector<128x64xf32>
    %9 = vector.extract_strided_slice %8 {offsets = [0, 0], sizes = [128, 32], strides = [1, 1]} : vector<128x64xf32> to vector<128x32xf32>
    %10 = arith.truncf %9 : vector<128x32xf32> to vector<128x32xbf16>
    %11 = vector.extract_strided_slice %8 {offsets = [0, 32], sizes = [128, 32], strides = [1, 1]} : vector<128x64xf32> to vector<128x32xf32>
    %12 = arith.truncf %11 : vector<128x32xf32> to vector<128x32xbf16>
    %c0_7 = arith.constant 0 : index
    %c0_8 = arith.constant 0 : index
    %13 = vector.load %arg4[%c0_7, %c0_8] : memref<32x32xbf16, #tpu.memory_space<vmem>>, vector<32x32xbf16>
    %cst_9 = arith.constant dense<0.000000e+00> : vector<128x32xf32>
    %14 = tpu.matmul %10, %13, %cst_9 {dimension_numbers = #tpu.dot_dimension_numbers<[1], [0], [0], [1], [0, 0, 1, 1], [], []>} : vector<128x32xbf16>, vector<32x32xbf16>, vector<128x32xf32> -> vector<128x32xf32>
    %c0_10 = arith.constant 0 : index
    %c0_11 = arith.constant 0 : index
    %15 = vector.load %arg5[%c0_10, %c0_11] : memref<1x32xf32, #tpu.memory_space<vmem>>, vector<1x32xf32>
    %16 = vector.broadcast %15 : vector<1x32xf32> to vector<128x32xf32>
    %17 = arith.addf %14, %16 : vector<128x32xf32>
    %18 = math.tanh %17 : vector<128x32xf32>
    %c0_12 = arith.constant 0 : index
    %c0_13 = arith.constant 0 : index
    %19 = vector.load %arg6[%c0_12, %c0_13] : memref<32x32xbf16, #tpu.memory_space<vmem>>, vector<32x32xbf16>
    %cst_14 = arith.constant dense<0.000000e+00> : vector<128x32xf32>
    %20 = tpu.matmul %12, %19, %cst_14 {dimension_numbers = #tpu.dot_dimension_numbers<[1], [0], [0], [1], [0, 0, 1, 1], [], []>} : vector<128x32xbf16>, vector<32x32xbf16>, vector<128x32xf32> -> vector<128x32xf32>
    %c0_15 = arith.constant 0 : index
    %c0_16 = arith.constant 0 : index
    %21 = vector.load %arg7[%c0_15, %c0_16] : memref<1x32xf32, #tpu.memory_space<vmem>>, vector<1x32xf32>
    %22 = vector.broadcast %21 : vector<1x32xf32> to vector<128x32xf32>
    %23 = arith.addf %20, %22 : vector<128x32xf32>
    %24 = math.tanh %23 : vector<128x32xf32>
    %25 = arith.truncf %18 : vector<128x32xf32> to vector<128x32xbf16>
    %26 = arith.truncf %24 : vector<128x32xf32> to vector<128x32xbf16>
    %c0_17 = arith.constant 0 : index
    %c0_18 = arith.constant 0 : index
    %27 = vector.load %arg8[%c0_17, %c0_18] : memref<32x48xbf16, #tpu.memory_space<vmem>>, vector<32x48xbf16>
    %cst_19 = arith.constant dense<0.000000e+00> : vector<128x48xf32>
    %28 = tpu.matmul %25, %27, %cst_19 {dimension_numbers = #tpu.dot_dimension_numbers<[1], [0], [0], [1], [0, 0, 1, 1], [], []>} : vector<128x32xbf16>, vector<32x48xbf16>, vector<128x48xf32> -> vector<128x48xf32>
    %29 = vector.extract_strided_slice %28 {offsets = [0, 0], sizes = [128, 32], strides = [1, 1]} : vector<128x48xf32> to vector<128x32xf32>
    %30 = arith.truncf %29 : vector<128x32xf32> to vector<128x32xbf16>
    %31 = vector.extract_strided_slice %28 {offsets = [0, 32], sizes = [128, 16], strides = [1, 1]} : vector<128x48xf32> to vector<128x16xf32>
    %32 = arith.truncf %31 : vector<128x16xf32> to vector<128x16xbf16>
    %cst_20 = arith.constant dense<0.000000e+00> : vector<128x128xf32>
    %33 = tpu.matmul %26, %30, %cst_20 {dimension_numbers = #tpu.dot_dimension_numbers<[1], [1], [0], [0], [0, 0, 1, 0], [], []>} : vector<128x32xbf16>, vector<128x32xbf16>, vector<128x128xf32> -> vector<128x128xf32>
    %c0_21 = arith.constant 0 : index
    %c0_22 = arith.constant 0 : index
    %34 = vector.load %arg10[%c0_21, %c0_22] : memref<128x16xbf16, #tpu.memory_space<vmem>>, vector<128x16xbf16>
    %cst_23 = arith.constant dense<0.000000e+00> : vector<128x128xf32>
    %35 = tpu.matmul %32, %34, %cst_23 {dimension_numbers = #tpu.dot_dimension_numbers<[1], [1], [0], [0], [0, 0, 1, 0], [], []>} : vector<128x16xbf16>, vector<128x16xbf16>, vector<128x128xf32> -> vector<128x128xf32>
    %c0_i32 = arith.constant 0 : i32
    %36 = tpu.dynamic_rotate %35 by %c0_i32 dim 1 {stride = 1 : si32, stride_dimension = 0 : si32} : vector<128x128xf32>, i32 -> vector<128x128xf32>
    %37 = tpu.transpose %36, [1, 0] : vector<128x128xf32> -> vector<128x128xf32>
    %38 = arith.addf %33, %37 : vector<128x128xf32>
    %c0_24 = arith.constant 0 : index
    %c0_25 = arith.constant 0 : index
    %39 = memref.load %arg9[%c0_24, %c0_25] : memref<1x1xf32, #tpu.memory_space<smem>>
    %40 = vector.broadcast %39 : f32 to vector<128x128xf32>
    %41 = arith.addf %38, %40 : vector<128x128xf32>
    %42 = tpu.iota {dimensions = array<i32: 0>} : vector<128x128xi32>
    %43 = tpu.iota {dimensions = array<i32: 1>} : vector<128x128xi32>
    %44 = arith.cmpi sgt, %43, %42 : vector<128x128xi32>
    %cst_26 = arith.constant -1.000000e+10 : f32
    %45 = vector.broadcast %cst_26 : f32 to vector<128x128xf32>
    %46 = arith.select %44, %45, %41 : vector<128x128xi1>, vector<128x128xf32>
    %cst_27 = arith.constant dense<0xFF800000> : vector<128xf32>
    %47 = vector.multi_reduction <maximumf>, %46, %cst_27 [1] : vector<128x128xf32> to vector<128xf32>
    %48 = vector.shape_cast %47 : vector<128xf32> to vector<128x1xf32>
    %49 = vector.broadcast %48 : vector<128x1xf32> to vector<128x128xf32>
    %50 = arith.subf %46, %49 : vector<128x128xf32>
    %51 = math.exp %50 : vector<128x128xf32>
    %cst_28 = arith.constant dense<0.000000e+00> : vector<128xf32>
    %52 = vector.multi_reduction <add>, %51, %cst_28 [1] : vector<128x128xf32> to vector<128xf32>
    %53 = vector.shape_cast %52 : vector<128xf32> to vector<128x1xf32>
    %54 = tpu.reciprocal %53 {approx = true} : vector<128x1xf32> -> vector<128x1xf32>
    %55 = vector.broadcast %54 : vector<128x1xf32> to vector<128x128xf32>
    %56 = arith.mulf %51, %55 : vector<128x128xf32>
    %c0_29 = arith.constant 0 : index
    %c0_30 = arith.constant 0 : index
    %c0_31 = arith.constant 0 : index
    %57 = vector.load %arg11[%c0_29, %c0_30, %c0_31] : memref<1x128x128xf32, #tpu.memory_space<vmem>>, vector<1x128x128xf32>
    %58 = vector.shape_cast %57 : vector<1x128x128xf32> to vector<128x128xf32>
    %59 = vector.shape_cast %56 : vector<128x128xf32> to vector<1x128x128xf32>
    tpu.vector_store %arg11[%c0_29, %c0_30, %c0_31], %59 {strides = array<i32>} : memref<1x128x128xf32, #tpu.memory_space<vmem>>, vector<1x128x128xf32>,
    return
  }
  func.func @transform_0(%arg0: i32) -> (i32, i32, i32) {
    %c0_i32 = arith.constant 0 : i32
    %c0_i32_0 = arith.constant 0 : i32
    %c0_i32_1 = arith.constant 0 : i32
    return %arg0, %c0_i32, %c0_i32_0 : i32, i32, i32
  }
  func.func @transform_1(%arg0: i32) -> (i32, i32) {
    %c0_i32 = arith.constant 0 : i32
    %c0_i32_0 = arith.constant 0 : i32
    %c0_i32_1 = arith.constant 0 : i32
    return %c0_i32, %c0_i32_0 : i32, i32
  }
  func.func @transform_2(%arg0: i32) -> (i32, i32) {
    %c0_i32 = arith.constant 0 : i32
    %c0_i32_0 = arith.constant 0 : i32
    %c0_i32_1 = arith.constant 0 : i32
    return %c0_i32, %c0_i32_0 : i32, i32
  }
  func.func @transform_3(%arg0: i32) -> (i32, i32) {
    %c0_i32 = arith.constant 0 : i32
    %c0_i32_0 = arith.constant 0 : i32
    %c0_i32_1 = arith.constant 0 : i32
    return %c0_i32, %c0_i32_0 : i32, i32
  }
  func.func @transform_4(%arg0: i32) -> (i32, i32) {
    %c0_i32 = arith.constant 0 : i32
    %c0_i32_0 = arith.constant 0 : i32
    %c0_i32_1 = arith.constant 0 : i32
    return %c0_i32, %c0_i32_0 : i32, i32
  }
  func.func @transform_5(%arg0: i32) -> (i32, i32) {
    %c0_i32 = arith.constant 0 : i32
    %c0_i32_0 = arith.constant 0 : i32
    %c0_i32_1 = arith.constant 0 : i32
    return %c0_i32, %c0_i32_0 : i32, i32
  }
  func.func @transform_6(%arg0: i32) -> (i32, i32) {
    %c0_i32 = arith.constant 0 : i32
    %c0_i32_0 = arith.constant 0 : i32
    %c0_i32_1 = arith.constant 0 : i32
    return %c0_i32, %c0_i32_0 : i32, i32
  }
  func.func @transform_7(%arg0: i32) -> (i32, i32) {
    %c0_i32 = arith.constant 0 : i32
    %c0_i32_0 = arith.constant 0 : i32
    %c0_i32_1 = arith.constant 0 : i32
    return %c0_i32, %c0_i32_0 : i32, i32
  }
  func.func @transform_8(%arg0: i32) -> (i32, i32) {
    %c0_i32 = arith.constant 0 : i32
    %c0_i32_0 = arith.constant 0 : i32
    %c0_i32_1 = arith.constant 0 : i32
    return %c0_i32, %c0_i32_0 : i32, i32
  }
  func.func @transform_9(%arg0: i32) -> (i32, i32) {
    %c0_i32 = arith.constant 0 : i32
    %c0_i32_0 = arith.constant 0 : i32
    %c0_i32_1 = arith.constant 0 : i32
    return %c0_i32, %c0_i32_0 : i32, i32
  }
  func.func @transform_10(%arg0: i32) -> (i32, i32, i32) {
    %c0_i32 = arith.constant 0 : i32
    %c0_i32_0 = arith.constant 0 : i32
    %c0_i32_1 = arith.constant 0 : i32
    return %arg0, %c0_i32, %c0_i32_0 : i32, i32, i32
  }
}

</mosaic_0001>

<bundles_post_ra>
// kernel: tpu_custom_call.1
= control target key start
LH: loop header
LB: loop body
LE: loop exit
PB: predicated region body
PF: predicated region fallthrough
CT: control target
= control target key end

     0   :  { %s3042_s0 = inlined_call_operand.vmem [shape: bf16[2,128,32], index: 0, kind: input, shape index: {}]   ;;  %s3043_s1 = inlined_call_operand.vmem [shape: bf16[32,64], index: 1, kind: input, shape index: {}]   ;;  %s3044_s2 = inlined_call_operand.vmem [shape: f32[1,64], index: 2, kind: input, shape index: {}]   ;;  %s3045_s3 = inlined_call_operand.vmem [shape: bf16[32,32], index: 3, kind: input, shape index: {}]   ;;  %s3046_s4 = inlined_call_operand.vmem [shape: f32[1,32], index: 4, kind: input, shape index: {}]   ;;  %s3047_s5 = inlined_call_operand.vmem [shape: bf16[32,32], index: 5, kind: input, shape index: {}]   ;;  %s3048_s6 = inlined_call_operand.vmem [shape: f32[1,32], index: 6, kind: input, shape index: {}]   ;;  %s3049_s7 = inlined_call_operand.vmem [shape: bf16[32,48], index: 7, kind: input, shape index: {}]   ;;  %s3050_s8 = inlined_call_operand.<no memory space> [shape: f32[1,1], index: 8, kind: input, shape index: {}]   ;;  %s3051_s9 = inlined_call_operand.vmem [shape: bf16[128,16], index: 9, kind: input, shape index: {}]   ;;  %s3052_s10 = inlined_call_operand.hbm [shape: f32[2,128,128], index: 10, kind: output, shape index: {}]  }
   0x1   :  { %15 = sst [smem:[#allocation2]] %s3050_s8 }
   0x2   :  { %16 = vsyncpa [#allocation4], 0 }
   0x3   :  { %18 = vsyncpa [#allocation4 + $0x1], 0  ;;  %s2532_s15 = smov 0   ;;  %s2534_s16 = smov 0  }
   0x4   :  { %s2536_s17 = smov 0   ;;  %s2538_s18 = smov 0  }
   0x5 LB: > { %s2553_s8 = sadd.s32 4294967295, %s2452_s18   ;;  %s1861_s19 = sadd.s32 4294967294, %s2452_s18   ;;  %s2452_s18 = sphi %s2538_s18, %s3058_s18   ;;  %s2448_s17 = sphi %s2536_s17, %s3057_s17   ;;  %s2444_s16 = sphi %s2534_s16, %s3056_s16   ;;  %s2440_s15 = sphi %s2532_s15, %s3055_s15  }
   0x6   : > { %s2557_s20 = sadd.s32 1, %s2452_s18   ;;  %s246_s21 = sadd.s32 1, %s2448_s17 }
   0x7   : > { %s243_s22 = ssub.s32 %s2452_s18, %s2557_s20  ;;  %p256_p0 = scmp.ne.s32.totalorder %s2448_s17, %s2444_s16 }
   0x8   : > { %p244_p1 = scmp.eq.s32.totalorder %s243_s22, 0  ;;  %p257_p2 = scmp.eq.s32.totalorder %s2553_s8, 1 }
   0x9   : > { %p262_p3 = scmp.ne.s32.totalorder %s2444_s16, %s2440_s15  ;;  %p263_p4 = scmp.eq.s32.totalorder %s1861_s19, 1 }
   0xa   : > { %s2568_s23 = scalar_select %p244_p1, %s2448_s17, %s246_s21  }
   0xb   : > { %p2570_p5 = por %p257_p2, %p256_p0  ;;  %p2574_p6 = por %p263_p4, %p262_p3 }
   0xc   : > { %p1864_p7 = scmp.ge.s32.totalorder %s2452_s18, 1  ;;  %p316_p8 = scmp.lt.s32.totalorder %s2452_s18, 3 }
   0xe   : > { %p317_p9 = pnand %p1864_p7, %p316_p8 }
   0xf   : > { %p354_p10 = scmp.lt.s32.totalorder (!%p317_p9), %s2553_s8, 1  ;;  %s2454_s13 = smov (!%p317_p9), 96  }
  0x10   : > { %320 = sbr.rel (%p317_p9) target bundleno = 1597 (0x63d), region = 60  ;;  %s2456_s21 = smov (!%p317_p9), 256  }
  0x11   : > { %s2457_s22 = smov (!%p317_p9), 264   ;;  %s2458_s26 = smov (!%p317_p9), 304  }
  0x12   : > { %s2459_s27 = smov (!%p317_p9), 280   ;;  %s2460_s28 = smov (!%p317_p9), 288  }
  0x13   : > { %s2461_s29 = smov (!%p317_p9), 296   ;;  %s2464_s12 = smov (!%p317_p9), 320  }
  0x14   : > { %s2466_s19 = smov (!%p317_p9), 368  }
  0x15   : > { %v2240_v0 = vld [vmem:[%s3043_s1 + $0x8] sm:$0xff]   ;;  %v2241_v1 = vld [vmem:[%s3043_s1] sm:$0xff]   ;;  %s355_s30 = scalar_select %p354_p10, %s2553_s8, 1  ;;  %vm439_vm0 = vcmask 261120   ;;  %vm1170_vm1 = vcmask 130048  }
  0x16   : > { %2022 = vmatprep.subr.bf16.mxu0 %v2240_v0  ;;  %v2250_v10 = vld [vmem:[%s3045_s3 + $0x8] sm:$0xff]   ;;  %v2251_v11 = vld [vmem:[%s3045_s3] sm:$0xff]  }
  0x17   : > { %2023 = vmatpush3.bf16.msra.mxu0 %v2240_v0  ;;  %s1948_s11 = sshll.u32 %s355_s30, 6  ;;  %2042 = vmatprep.subr.bf16.mxu1 %v2250_v10  ;;  %v2252_v12 = vld [vmem:[%s3047_s5 + $0x8] sm:$0xff]   ;;  %v2253_v13 = vld [vmem:[%s3047_s5] sm:$0xff]   ;;  %s2462_s30 = smov 336  }
  0x18   : > { %2024 = vmatprep.subr.bf16.mxu0 %v2241_v1  ;;  %s358_s14 = scalar_lea.vmem %s3042_s0, %s1948_s11  ;;  %2043 = vmatpush3.bf16.msra.mxu1 %v2250_v10  ;;  %v2614_v16 = vld [vmem:[%s3044_s2] ss:$0 sm:$0xff]  ;;  %v2254_v62 = vld [vmem:[%s3049_s7 + $0x8] sm:$0xff]   ;;  %s2463_s11 = smov 312  }
  0x19   : > { %v2242_v2 = vld [vmem:[%s358_s14] sm:$0xff]   ;;  %v2243_v3 = vld [vmem:[%s358_s14 + $0x8] sm:$0xff]   ;;  %v2244_v4 = vld [vmem:[%s358_s14 + $0x10] sm:$0xff]   ;;  %2044 = vmatprep.subr.bf16.mxu1 %v2251_v11 }
  0x1a   : > { %2026 = vmatprep.mubr.msk.bf16.mxu0 %vm439_vm0, %v2242_v2  ;;  %v2245_v5 = vld [vmem:[%s358_s14 + $0x18] sm:$0xff]   ;;  %v2246_v6 = vld [vmem:[%s358_s14 + $0x20] sm:$0xff]   ;;  %v2247_v7 = vld [vmem:[%s358_s14 + $0x28] sm:$0xff]  }
  0x1b   : > { %2025 = vmatpush3.bf16.msra.mxu0 %v2241_v1  ;;  %v2248_v8 = vld [vmem:[%s358_s14 + $0x30] sm:$0xff]   ;;  %v2249_v9 = vld [vmem:[%s358_s14 + $0x38] sm:$0xff]   ;;  %s2465_s14 = smov 328  }
  0x1c   : > { %2045 = vmatpush3.bf16.msra.mxu1 %v2251_v11  ;;  %2062 = vmatprep.subr.bf16.mxu0 %v2252_v12 }
  0x1d   : > { %2082 = vmatprep.subr.bf16.mxu1 %v2254_v62 }
  0x1e   : > { %2027 = vmatmul.mubr.msk.bf16.vlgmr.msra.gmra.mxu0 %vm439_vm0, %v2243_v3 }
  0x1f   : > { %2030 = vmatprep.mubr.msk.bf16.mxu0 %vm439_vm0, %v2244_v4  ;;  %2063 = vmatpush3.bf16.msra.mxu0 %v2252_v12 }
  0x20   : > { %2064 = vmatprep.subr.bf16.mxu0 %v2253_v13 }
  0x23   : > { %2065 = vmatpush3.bf16.msra.mxu0 %v2253_v13 }
  0x26   : > { %2031 = vmatmul.mubr.msk.bf16.gmra.mxu0 %vm439_vm0, %v2245_v5 }
  0x27   : > { %2034 = vmatprep.mubr.msk.bf16.mxu0 %vm439_vm0, %v2246_v6 }
  0x2e   : > { %2035 = vmatmul.mubr.msk.bf16.gmra.mxu0 %vm439_vm0, %v2247_v7 }
  0x2f   : > { %2038 = vmatprep.mubr.msk.bf16.mxu0 %vm439_vm0, %v2248_v8  ;;  %v2255_v8 = vld [vmem:[%s3049_s7] sm:$0xff]  }
  0x36   : > { %2039 = vmatmul.mubr.msk.bf16.gmra.mxu0 %vm439_vm0, %v2249_v9 }
  0xde   : > { %v2028_v14 = vpop.f32.mrf.mxu0 }
  0xdf   : > { %v507_v20 = vadd.f32 %v2028_v14, %v2614_v16 }
  0xe0   : > { %v498_v15 = vpop.f32.mrf.mxu0 }
  0xe1   : > { %v499_v18 = vadd.f32 %v2614_v16, %v498_v15  ;;  %v563_v27 = vmax.f32 %v507_v20, 0.0 }
  0xe2   : > { %v2029_v17 = vpop.f32.mrf.mxu0 }
  0xe3   : > { %v510_v19 = vadd.f32 %v2029_v17, %v2614_v16  ;;  %v561_v25 = vmax.f32 %v499_v18, 0.0  ;;  %v1887_v18 = vld [vmem:[%s3046_s4] ss:$0 sm:$0xff] }
  0xe4   : > { %v501_v21 = vpop.f32.mrf.mxu0 }
  0xe5   : > { %v502_v22 = vadd.f32 %v2614_v16, %v501_v21  ;;  %v564_v23 = vmax.f32 %v510_v19, 0.0 }
  0xe6   : > { %v2032_v24 = vpop.f32.mrf.mxu0 }
  0xe7   : > { %v562_v26 = vmax.f32 %v502_v22, 0.0  ;;  %v523_v28 = vadd.f32 %v2032_v24, %v2614_v16  ;;  %v578_v32 = vpack.c.bf16 %v564_v23, %v563_v27 }
  0xe8   : > { %v514_v29 = vpop.f32.mrf.mxu0 }
  0xe9   : > { %v515_v30 = vadd.f32 %v2614_v16, %v514_v29  ;;  %v577_v31 = vpack.c.bf16 %v562_v26, %v561_v25  ;;  %v567_v35 = vmax.f32 %v523_v28, 0.0 }
  0xea   : > { %v2033_v33 = vpop.f32.mrf.mxu0 }
  0xeb   : > { %v526_v34 = vadd.f32 %v2033_v33, %v2614_v16  ;;  %764 = vrot.lane.b32.xlu0 %v577_v31, %s2454_s13  ;;  %2046 = vmatprep.mubr.msk.bf16.mxu1 %vm439_vm0, %v577_v31  ;;  %v565_v37 = vmax.f32 %v515_v30, 0.0 }
  0xec   : > { %v517_v36 = vpop.f32.mrf.mxu0  ;;  %2047 = vmatmul.mubr.msk.bf16.vlgmr.msra.gmra.mxu1 %vm439_vm0, %v578_v32 }
  0xed   : > { %v568_v38 = vmax.f32 %v526_v34, 0.0  ;;  %v518_v39 = vadd.f32 %v2614_v16, %v517_v36  ;;  %2083 = vmatpush3.bf16.msra.mxu1 %v2254_v62 }
  0xee   : > { %v2036_v40 = vpop.f32.mrf.mxu0  ;;  %2084 = vmatprep.subr.bf16.mxu1 %v2255_v8 }
  0xef   : > { %v566_v41 = vmax.f32 %v518_v39, 0.0  ;;  %766 = vrot.lane.b32.xlu0 %v578_v32, %s2454_s13  ;;  %v580_v42 = vpack.c.bf16 %v568_v38, %v567_v35  ;;  %v539_v43 = vadd.f32 %v2036_v40, %v2614_v16 }
  0xf0   : > { %v530_v44 = vpop.f32.mrf.mxu0 }
  0xf1   : > { %v531_v45 = vadd.f32 %v2614_v16, %v530_v44  ;;  %v579_v46 = vpack.c.bf16 %v566_v41, %v565_v37  ;;  %v571_v49 = vmax.f32 %v539_v43, 0.0  ;;  %2085 = vmatpush3.bf16.msra.mxu1 %v2255_v8 }
  0xf2   : > { %v2037_v47 = vpop.f32.mrf.mxu0 }
  0xf3   : > { %v542_v48 = vadd.f32 %v2037_v47, %v2614_v16  ;;  %768 = vrot.lane.b32.xlu1 %v579_v46, %s2454_s13  ;;  %2050 = vmatprep.mubr.msk.bf16.mxu1 %vm439_vm0, %v579_v46  ;;  %v569_v51 = vmax.f32 %v531_v45, 0.0 }
  0xf4   : > { %v533_v50 = vpop.f32.mrf.mxu0  ;;  %2051 = vmatmul.mubr.msk.bf16.gmra.mxu1 %vm439_vm0, %v580_v42 }
  0xf5   : > { %v572_v52 = vmax.f32 %v542_v48, 0.0  ;;  %v534_v53 = vadd.f32 %v2614_v16, %v533_v50 }
  0xf6   : > { %v2040_v54 = vpop.f32.mrf.mxu0 }
  0xf7   : > { %v570_v55 = vmax.f32 %v534_v53, 0.0  ;;  %v555_v56 = vadd.f32 %v2040_v54, %v2614_v16  ;;  %770 = vrot.lane.b32.xlu1 %v580_v42, %s2454_s13  ;;  %v582_v57 = vpack.c.bf16 %v572_v52, %v571_v49 }
  0xf8   : > { %v546_v58 = vpop.f32.mrf.mxu0 }
  0xf9   : > { %v581_v59 = vpack.c.bf16 %v570_v55, %v569_v51  ;;  %v547_v60 = vadd.f32 %v2614_v16, %v546_v58  ;;  %v575_v63 = vmax.f32 %v555_v56, 0.0 }
  0xfa   : > { %v2041_v61 = vpop.f32.mrf.mxu0 }
  0xfb   : > { %v558_v0 = vadd.f32 %v2041_v61, %v2614_v16  ;;  %2054 = vmatprep.mubr.msk.bf16.mxu1 %vm439_vm0, %v581_v59  ;;  %772 = vrot.lane.b32.xlu0 %v581_v59, %s2454_s13  ;;  %v573_v2 = vmax.f32 %v547_v60, 0.0 }
  0xfc   : > { %v549_v1 = vpop.f32.mrf.mxu0  ;;  %2055 = vmatmul.mubr.msk.bf16.gmra.mxu1 %vm439_vm0, %v582_v57  ;;  %774 = vrot.lane.b32.xlu1 %v582_v57, %s2454_s13 }
  0xfd   : > { %v576_v3 = vmax.f32 %v558_v0, 0.0  ;;  %v550_v4 = vadd.f32 %v2614_v16, %v549_v1 }
  0xff   : > { %v584_v5 = vpack.c.bf16 %v576_v3, %v575_v63  ;;  %v574_v6 = vmax.f32 %v550_v4, 0.0 }
 0x101   : > { %v583_v7 = vpack.c.bf16 %v574_v6, %v573_v2  ;;  %778 = vrot.lane.b32.xlu1 %v584_v5, %s2454_s13 }
 0x103   : > { %2058 = vmatprep.mubr.msk.bf16.mxu1 %vm439_vm0, %v583_v7  ;;  %776 = vrot.lane.b32.xlu0 %v583_v7, %s2454_s13 }
 0x104   : > { %2059 = vmatmul.mubr.msk.bf16.gmra.mxu1 %vm439_vm0, %v584_v5 }
 0x15d   : > { %v765_v9 = vpop.permute.xlu0 %764 }
 0x15e   : > { %2066 = vmatprep.mubr.msk.bf16.mxu0 %vm439_vm0, %v765_v9 }
 0x161   : > { %v767_v10 = vpop.permute.xlu0 %766 }
 0x162   : > { %2067 = vmatmul.mubr.msk.bf16.vlgmr.msra.gmra.mxu0 %vm439_vm0, %v767_v10  ;;  %v2676_v10 = vld [vmem:[%s3048_s6] ss:$0 sm:$0xff] }
 0x165   : > { %v769_v11 = vpop.permute.xlu1 %768 }
 0x166   : > { %2070 = vmatprep.mubr.msk.bf16.mxu0 %vm439_vm0, %v769_v11 }
 0x169   : > { %v771_v12 = vpop.permute.xlu1 %770 }
 0x16a   : > { %2071 = vmatmul.mubr.msk.bf16.gmra.mxu0 %vm439_vm0, %v771_v12 }
 0x16d   : > { %v773_v13 = vpop.permute.xlu0 %772 }
 0x16e   : > { %2074 = vmatprep.mubr.msk.bf16.mxu0 %vm439_vm0, %v773_v13  ;;  %v775_v14 = vpop.permute.xlu1 %774 }
 0x172   : > { %2075 = vmatmul.mubr.msk.bf16.gmra.mxu0 %vm439_vm0, %v775_v14 }
 0x173   : > { %v779_v16 = vpop.permute.xlu1 %778 }
 0x175   : > { %v777_v15 = vpop.permute.xlu0 %776 }
 0x176   : > { %2078 = vmatprep.mubr.msk.bf16.mxu0 %vm439_vm0, %v777_v15 }
 0x17a   : > { %2079 = vmatmul.mubr.msk.bf16.gmra.mxu0 %vm439_vm0, %v779_v16 }
 0x1ac   : > { %v2048_v17 = vpop.f32.mrf.mxu1 }
 0x1ad   : > { %v675_v23 = vadd.f32 %v2048_v17, %v1887_v18 }
 0x1ae   : > { %v666_v19 = vpop.f32.mrf.mxu1 }
 0x1af   : > { %v667_v20 = vadd.f32 %v1887_v18, %v666_v19 }
 0x1b0   : > { %v2049_v21 = vpop.f32.mrf.mxu1 }
 0x1b1   : > { %v678_v22 = vadd.f32 %v2049_v21, %v1887_v18  ;;  %2264 = vtanh.f32 %v667_v20 }
 0x1b2   : > { %v669_v24 = vpop.f32.mrf.mxu1 }
 0x1b3   : > { %v670_v25 = vadd.f32 %v1887_v18, %v669_v24  ;;  %2266 = vtanh.f32 %v678_v22 }
 0x1b4   : > { %v2052_v26 = vpop.f32.mrf.mxu1 }
 0x1b5   : > { %2268 = vtanh.f32 %v670_v25  ;;  %v691_v31 = vadd.f32 %v2052_v26, %v1887_v18  ;;  %v2256_v25 = vld [vmem:[%s3051_s9 + $0x38] sm:$0xff]  }
 0x1b6   : > { %2270 = vtanh.f32 %v675_v23  ;;  %v682_v27 = vpop.f32.mrf.mxu1  ;;  %2166 = vmatprep.subr.msk.bf16.mxu0 %vm1170_vm1, %v2256_v25  ;;  %v1217_v26 = vsel %vm1170_vm1, %v2256_v25, 0 }
 0x1b7   : > { %v683_v28 = vadd.f32 %v1887_v18, %v682_v27  ;;  %2103 = vmatpush3.bf16.xpose.msra.mxu0 %v1217_v26  ;;  %v2257_v27 = vld [vmem:[%s3051_s9 + $0x30] sm:$0xff]  }
 0x1b8   : > { %v2053_v29 = vpop.f32.mrf.mxu1  ;;  %2167 = vmatprep.subr.msk.bf16.mxu0 %vm1170_vm1, %v2257_v27 }
 0x1b9   : > { %v694_v30 = vadd.f32 %v2053_v29, %v1887_v18  ;;  %2272 = vtanh.f32 %v683_v28  ;;  %v1214_v28 = vsel %vm1170_vm1, %v2257_v27, 0  ;;  %v2258_v29 = vld [vmem:[%s3051_s9 + $0x28] sm:$0xff]  }
 0x1ba   : > { %v685_v32 = vpop.f32.mrf.mxu1 }
 0x1bb   : > { %v686_v33 = vadd.f32 %v1887_v18, %v685_v32  ;;  %2274 = vtanh.f32 %v694_v30  ;;  %v1211_v30 = vsel %vm1170_vm1, %v2258_v29, 0 }
 0x1bc   : > { %v2056_v34 = vpop.f32.mrf.mxu1 }
 0x1bd   : > { %2276 = vtanh.f32 %v686_v33  ;;  %v707_v35 = vadd.f32 %v2056_v34, %v1887_v18  ;;  %v2260_v33 = vld [vmem:[%s3051_s9 + $0x18] sm:$0xff]  }
 0x1be   : > { %2278 = vtanh.f32 %v691_v31  ;;  %v698_v36 = vpop.f32.mrf.mxu1  ;;  %v2265_v38 = vpop.eup %2264  ;;  %v2259_v31 = vld [vmem:[%s3051_s9 + $0x20] sm:$0xff]   ;;  %v1205_v34 = vsel %vm1170_vm1, %v2260_v33, 0 }
 0x1bf   : > { %v699_v37 = vadd.f32 %v1887_v18, %v698_v36  ;;  %2280 = vtanh.f32 %v707_v35  ;;  %2105 = vmatpush3.bf16.xpose.msra.mxu0 %v1214_v28  ;;  %v1208_v32 = vsel %vm1170_vm1, %v2259_v31, 0  ;;  %v2261_v35 = vld [vmem:[%s3051_s9 + $0x10] sm:$0xff]  }
 0x1c0   : > { %v2057_v39 = vpop.f32.mrf.mxu1  ;;  %v2267_v40 = vpop.eup %2266  ;;  %2168 = vmatprep.subr.msk.bf16.mxu0 %vm1170_vm1, %v2258_v29  ;;  %v1202_v36 = vsel %vm1170_vm1, %v2261_v35, 0 }
 0x1c1   : > { %v710_v41 = vadd.f32 %v2057_v39, %v1887_v18  ;;  %2282 = vtanh.f32 %v699_v37  ;;  %v2262_v37 = vld [vmem:[%s3051_s9 + $0x8] sm:$0xff]   ;;  %v2263_v39 = vld [vmem:[%s3051_s9] sm:$0xff]  }
 0x1c2   : > { %v2269_v42 = vpop.eup %2268  ;;  %v701_v43 = vpop.f32.mrf.mxu1 }
 0x1c3   : > { %v2271_v44 = vpop.eup %2270  ;;  %2284 = vtanh.f32 %v710_v41  ;;  %v702_v45 = vadd.f32 %v1887_v18, %v701_v43  ;;  %v929_v46 = vpack.c.bf16 %v2269_v42, %v2265_v38  ;;  %v1199_v38 = vsel %vm1170_vm1, %v2262_v37, 0 }
 0x1c4   : > { %v930_v47 = vpack.c.bf16 %v2267_v40, %v2271_v44  ;;  %v2060_v48 = vpop.f32.mrf.mxu1  ;;  %v1196_v40 = vsel %vm1170_vm1, %v2263_v39, 0 }
 0x1c5   : > { %2286 = vtanh.f32 %v702_v45  ;;  %v723_v49 = vadd.f32 %v2060_v48, %v1887_v18  ;;  %2086 = vmatprep.mubr.msk.bf16.mxu1 %vm439_vm0, %v929_v46 }
 0x1c6   : > { %v714_v50 = vpop.f32.mrf.mxu1  ;;  %2087 = vmatmul.mubr.msk.bf16.vlgmr.msra.gmra.mxu1 %vm439_vm0, %v930_v47  ;;  %v2273_v52 = vpop.eup %2272 }
 0x1c7   : > { %v715_v51 = vadd.f32 %v1887_v18, %v714_v50  ;;  %2288 = vtanh.f32 %v723_v49  ;;  %2107 = vmatpush3.bf16.xpose.msra.mxu0 %v1211_v30 }
 0x1c8   : > { %v2061_v53 = vpop.f32.mrf.mxu1  ;;  %v2275_v54 = vpop.eup %2274  ;;  %2169 = vmatprep.subr.msk.bf16.mxu0 %vm1170_vm1, %v2259_v31 }
 0x1c9   : > { %v726_v55 = vadd.f32 %v2061_v53, %v1887_v18  ;;  %2290 = vtanh.f32 %v715_v51 }
 0x1ca   : > { %v2277_v56 = vpop.eup %2276  ;;  %v717_v57 = vpop.f32.mrf.mxu1 }
 0x1cb   : > { %v2279_v58 = vpop.eup %2278  ;;  %2292 = vtanh.f32 %v726_v55  ;;  %v718_v59 = vadd.f32 %v1887_v18, %v717_v57  ;;  %v931_v60 = vpack.c.bf16 %v2277_v56, %v2273_v52 }
 0x1cc   : > { %v932_v61 = vpack.c.bf16 %v2275_v54, %v2279_v58  ;;  %v2281_v62 = vpop.eup %2280 }
 0x1cd   : > { %2294 = vtanh.f32 %v718_v59  ;;  %2090 = vmatprep.mubr.msk.bf16.mxu1 %vm439_vm0, %v931_v60 }
 0x1ce   : > { %2091 = vmatmul.mubr.msk.bf16.gmra.mxu1 %vm439_vm0, %v932_v61  ;;  %v2283_v63 = vpop.eup %2282 }
 0x1cf   : > { %2109 = vmatpush3.bf16.xpose.msra.mxu0 %v1208_v32 }
 0x1d0   : > { %v2285_v0 = vpop.eup %2284  ;;  %2170 = vmatprep.subr.msk.bf16.mxu0 %vm1170_vm1, %v2260_v33 }
 0x1d1   : > { %v934_v2 = vpack.c.bf16 %v2285_v0, %v2281_v62 }
 0x1d2   : > { %v2287_v1 = vpop.eup %2286 }
 0x1d3   : > { %v933_v3 = vpack.c.bf16 %v2287_v1, %v2283_v63 }
 0x1d4   : > { %v2289_v4 = vpop.eup %2288 }
 0x1d5   : > { %2094 = vmatprep.mubr.msk.bf16.mxu1 %vm439_vm0, %v933_v3 }
 0x1d6   : > { %2095 = vmatmul.mubr.msk.bf16.gmra.mxu1 %vm439_vm0, %v934_v2  ;;  %v2291_v5 = vpop.eup %2290 }
 0x1d7   : > { %2111 = vmatpush3.bf16.xpose.msra.mxu0 %v1205_v34 }
 0x1d8   : > { %v2293_v6 = vpop.eup %2292  ;;  %2171 = vmatprep.subr.msk.bf16.mxu0 %vm1170_vm1, %v2261_v35 }
 0x1d9   : > { %v936_v8 = vpack.c.bf16 %v2293_v6, %v2289_v4 }
 0x1da   : > { %v2295_v7 = vpop.eup %2294 }
 0x1db   : > { %v935_v9 = vpack.c.bf16 %v2295_v7, %v2291_v5 }
 0x1dd   : > { %2098 = vmatprep.mubr.msk.bf16.mxu1 %vm439_vm0, %v935_v9 }
 0x1de   : > { %2099 = vmatmul.mubr.msk.bf16.gmra.mxu1 %vm439_vm0, %v936_v8 }
 0x1df   : > { %2113 = vmatpush3.bf16.xpose.msra.mxu0 %v1202_v36 }
 0x1e0   : > { %2172 = vmatprep.subr.msk.bf16.mxu0 %vm1170_vm1, %v2262_v37 }
 0x1e7   : > { %2115 = vmatpush3.bf16.xpose.msra.mxu0 %v1199_v38 }
 0x1e8   : > { %2173 = vmatprep.subr.msk.bf16.mxu0 %vm1170_vm1, %v2263_v39 }
 0x1ef   : > { %2117 = vmatpush3.bf16.xpose.msra.mxu0 %v1196_v40 }
 0x222   : > { %v2068_v11 = vpop.f32.mrf.mxu0 }
 0x223   : > { %v859_v12 = vadd.f32 %v2068_v11, %v2676_v10 }
 0x224   : > { %v850_v13 = vpop.f32.mrf.mxu0 }
 0x225   : > { %v851_v14 = vadd.f32 %v2676_v10, %v850_v13  ;;  %2296 = vtanh.f32 %v859_v12 }
 0x226   : > { %v2069_v15 = vpop.f32.mrf.mxu0 }
 0x227   : > { %v862_v16 = vadd.f32 %v2069_v15, %v2676_v10 }
 0x228   : > { %v853_v17 = vpop.f32.mrf.mxu0 }
 0x229   : > { %2298 = vtanh.f32 %v862_v16  ;;  %v854_v18 = vadd.f32 %v2676_v10, %v853_v17 }
 0x22a   : > { %2300 = vtanh.f32 %v851_v14  ;;  %v2072_v3 = vpop.f32.mrf.mxu0 }
 0x22b   : > { %2302 = vtanh.f32 %v854_v18  ;;  %v875_v27 = vadd.f32 %v2072_v3, %v2676_v10 }
 0x22c   : > { %v866_v5 = vpop.f32.mrf.mxu0 }
 0x22d   : > { %v867_v18 = vadd.f32 %v2676_v10, %v866_v5 }
 0x22e   : > { %v2073_v6 = vpop.f32.mrf.mxu0 }
 0x230   : > { %v869_v8 = vpop.f32.mrf.mxu0 }
 0x231   : > { %v870_v16 = vadd.f32 %v2676_v10, %v869_v8 }
 0x232   : > { %v2682_v19 = vpop.eup %2296  ;;  %v2076_v9 = vpop.f32.mrf.mxu0 }
 0x233   : > { %2304 = vtanh.f32 %v870_v16  ;;  %v891_v29 = vadd.f32 %v2076_v9, %v2676_v10 }
 0x234   : > { %v882_v12 = vpop.f32.mrf.mxu0  ;;  %2306 = vtanh.f32 %v867_v18 }
 0x235   : > { %v883_v25 = vadd.f32 %v2676_v10, %v882_v12 }
 0x236   : > { %v2684_v20 = vpop.eup %2298  ;;  %v2077_v13 = vpop.f32.mrf.mxu0 }
 0x237   : > { %v2301_v21 = vpop.eup %2300  ;;  %v938_v22 = vpack.c.bf16 %v2684_v20, %v2682_v19  ;;  %v894_v32 = vadd.f32 %v2077_v13, %v2676_v10 }
 0x238   : > { %v2303_v23 = vpop.eup %2302  ;;  %v885_v15 = vpop.f32.mrf.mxu0 }
 0x239   : > { %v937_v24 = vpack.c.bf16 %v2303_v23, %v2301_v21  ;;  %v886_v26 = vadd.f32 %v2676_v10, %v885_v15 }
 0x23a   : > { %v2080_v17 = vpop.f32.mrf.mxu0 }
 0x23b   : > { %2150 = vmatprep.mubr.msk.bf16.mxu1 %vm439_vm0, %v937_v24  ;;  %v878_v24 = vadd.f32 %v2073_v6, %v2676_v10  ;;  %v907_v38 = vadd.f32 %v2080_v17, %v2676_v10 }
 0x23c   : > { %v898_v21 = vpop.f32.mrf.mxu0 }
 0x23d   : > { %2308 = vtanh.f32 %v878_v24  ;;  %v899_v33 = vadd.f32 %v2676_v10, %v898_v21 }
 0x23e   : > { %v2081_v28 = vpop.f32.mrf.mxu0  ;;  %2310 = vtanh.f32 %v883_v25 }
 0x23f   : > { %2312 = vtanh.f32 %v886_v26  ;;  %v910_v40 = vadd.f32 %v2081_v28, %v2676_v10 }
 0x240   : > { %2314 = vtanh.f32 %v875_v27  ;;  %v901_v30 = vpop.f32.mrf.mxu0  ;;  %v2305_v35 = vpop.eup %2304 }
 0x241   : > { %v902_v34 = vadd.f32 %v2676_v10, %v901_v30  ;;  %2316 = vtanh.f32 %v891_v29  ;;  %v2307_v36 = vpop.eup %2306 }
 0x242   : > { %2318 = vtanh.f32 %v894_v32  ;;  %v939_v37 = vpack.c.bf16 %v2305_v35, %v2307_v36  ;;  %v1574_v32 = vlaneseq }
 0x243   : > { %2320 = vtanh.f32 %v899_v33 }
 0x244   : > { %2322 = vtanh.f32 %v902_v34  ;;  %v2788_v34 = vshrl.u32 %v1574_v32, 7  ;;  %v2790_v35 = vand.u32 127, %v1574_v32 }
 0x245   : > { %2324 = vtanh.f32 %v907_v38 }
 0x246   : > { %2326 = vtanh.f32 %v910_v40  ;;  %vm1593_vm2 = vcmp.gt.s32.totalorder %v2790_v35, %v2788_v34  ;;  %v1576_v40 = vadd.s32 8, %v2788_v34 }
 0x248   : > { %vm1594_vm3 = vcmp.gt.s32.totalorder %v2790_v35, %v1576_v40 }
 0x24a   : > { %v2309_v39 = vpop.eup %2308 }
 0x286   : > { %v2088_v41 = vpop.f32.mrf.mxu1 }
 0x288   : > { %v1019_v42 = vpop.f32.mrf.mxu1 }
 0x28a   : > { %v2089_v43 = vpop.f32.mrf.mxu1 }
 0x28b   : > { %v1083_v44 = vpack.c.bf16 %v2089_v43, %v2088_v41  ;;  %v2311_v41 = vpop.eup %2310 }
 0x28c   : > { %v1022_v45 = vpop.f32.mrf.mxu1 }
 0x28d   : > { %v2729_v46 = vpack.c.bf16 %v1022_v45, %v1019_v42  ;;  %1116 = vrot.lane.b32.xlu1 %v1083_v44, %s2454_s13  ;;  %v1439_v23 = vsel %vm439_vm0, %v1083_v44, 0  ;;  %v2313_v42 = vpop.eup %2312 }
 0x28e   : > { %v2092_v47 = vpop.f32.mrf.mxu1  ;;  %v2315_v43 = vpop.eup %2314  ;;  %v941_v45 = vpack.c.bf16 %v2313_v42, %v2311_v41 }
 0x28f   : > { %1114 = vrot.lane.b32.xlu0 %v2729_v46, %s2454_s13  ;;  %v1436_v31 = vsel %vm439_vm0, %v2729_v46, 0 }
 0x290   : > { %v1035_v48 = vpop.f32.mrf.mxu1 }
 0x292   : > { %v2093_v49 = vpop.f32.mrf.mxu1 }
 0x293   : > { %v1085_v50 = vpack.c.bf16 %v2093_v49, %v2092_v47 }
 0x294   : > { %v1038_v51 = vpop.f32.mrf.mxu1 }
 0x295   : > { %v1084_v52 = vpack.c.bf16 %v1038_v51, %v1035_v48  ;;  %1120 = vrot.lane.b32.xlu1 %v1085_v50, %s2454_s13  ;;  %v1445_v11 = vsel %vm439_vm0, %v1085_v50, 0 }
 0x296   : > { %v2096_v53 = vpop.f32.mrf.mxu1 }
 0x297   : > { %1118 = vrot.lane.b32.xlu0 %v1084_v52, %s2454_s13  ;;  %v1442_v14 = vsel %vm439_vm0, %v1084_v52, 0 }
 0x298   : > { %v1051_v54 = vpop.f32.mrf.mxu1 }
 0x29a   : > { %v2097_v55 = vpop.f32.mrf.mxu1 }
 0x29b   : > { %v1087_v56 = vpack.c.bf16 %v2097_v55, %v2096_v53 }
 0x29c   : > { %v1054_v57 = vpop.f32.mrf.mxu1 }
 0x29d   : > { %v1086_v58 = vpack.c.bf16 %v1054_v57, %v1051_v54  ;;  %1124 = vrot.lane.b32.xlu1 %v1087_v56, %s2454_s13  ;;  %v1451_v4 = vsel %vm439_vm0, %v1087_v56, 0 }
 0x29e   : > { %v2100_v59 = vpop.f32.mrf.mxu1 }
 0x29f   : > { %1122 = vrot.lane.b32.xlu0 %v1086_v58, %s2454_s13  ;;  %v1448_v7 = vsel %vm439_vm0, %v1086_v58, 0 }
 0x2a0   : > { %v1067_v60 = vpop.f32.mrf.mxu1 }
 0x2a2   : > { %v2101_v61 = vpop.f32.mrf.mxu1 }
 0x2a3   : > { %v1089_v62 = vpack.c.bf16 %v2101_v61, %v2100_v59 }
 0x2a4   : > { %v1070_v63 = vpop.f32.mrf.mxu1 }
 0x2a5   : > { %v1088_v0 = vpack.c.bf16 %v1070_v63, %v1067_v60  ;;  %2174 = vmatprep.subr.msk.bf16.mxu1 %vm439_vm0, %v1089_v62  ;;  %v1457_v1 = vsel %vm439_vm0, %v1089_v62, 0  ;;  %1128 = vrot.lane.b32.xlu1 %v1089_v62, %s2454_s13 }
 0x2a6   : > { %2135 = vmatpush3.bf16.xpose.msra.mxu1 %v1457_v1 }
 0x2a7   : > { %1126 = vrot.lane.b32.xlu0 %v1088_v0, %s2454_s13  ;;  %2175 = vmatprep.subr.msk.bf16.mxu1 %vm439_vm0, %v1088_v0  ;;  %v1454_v2 = vsel %vm439_vm0, %v1088_v0, 0  ;;  %s2455_s13 = smov 272  }
 0x2ae   : > { %2137 = vmatpush3.bf16.xpose.msra.mxu1 %v1454_v2 }
 0x2af   : > { %2176 = vmatprep.subr.msk.bf16.mxu1 %vm439_vm0, %v1087_v56 }
 0x2b6   : > { %2139 = vmatpush3.bf16.xpose.msra.mxu1 %v1451_v4 }
 0x2b7   : > { %2177 = vmatprep.subr.msk.bf16.mxu1 %vm439_vm0, %v1086_v58 }
 0x2be   : > { %2141 = vmatpush3.bf16.xpose.msra.mxu1 %v1448_v7 }
 0x2bf   : > { %2178 = vmatprep.subr.msk.bf16.mxu1 %vm439_vm0, %v1085_v50 }
 0x2c6   : > { %2143 = vmatpush3.bf16.xpose.msra.mxu1 %v1445_v11 }
 0x2c7   : > { %2179 = vmatprep.subr.msk.bf16.mxu1 %vm439_vm0, %v1084_v52 }
 0x2ce   : > { %2145 = vmatpush3.bf16.xpose.msra.mxu1 %v1442_v14 }
 0x2cf   : > { %2180 = vmatprep.subr.msk.bf16.mxu1 %vm439_vm0, %v1083_v44  ;;  %v940_v44 = vpack.c.bf16 %v2309_v39, %v2315_v43 }
 0x2d6   : > { %2147 = vmatpush3.bf16.xpose.msra.mxu1 %v1439_v23 }
 0x2d7   : > { %2181 = vmatprep.subr.msk.bf16.mxu1 %vm439_vm0, %v2729_v46  ;;  %v2317_v46 = vpop.eup %2316 }
 0x2d8   : > { %v2319_v19 = vpop.eup %2318 }
 0x2d9   : > { %v2321_v20 = vpop.eup %2320  ;;  %v942_v47 = vpack.c.bf16 %v2319_v19, %v2317_v46  ;;  %v1577_v46 = vadd.s32 16, %v2788_v34 }
 0x2db   : > { %vm1595_vm4 = vcmp.gt.s32.totalorder %v2790_v35, %v1577_v46  ;;  %v1587_v46 = vadd.s32 96, %v2788_v34 }
 0x2dd   : > { %vm1605_vm14 = vcmp.gt.s32.totalorder %v2790_v35, %v1587_v46 }
 0x2de   : > { %2149 = vmatpush3.bf16.xpose.msra.mxu1 %v1436_v31 }
 0x2e5   : > { %2151 = vmatmul.mubr.msk.bf16.vlgmr.msra.gmra.mxu1 %vm439_vm0, %v938_v22  ;;  %v2323_v22 = vpop.eup %2322 }
 0x2e6   : > { %2154 = vmatprep.mubr.msk.bf16.mxu1 %vm439_vm0, %v939_v37  ;;  %v943_v48 = vpack.c.bf16 %v2323_v22, %v2321_v20  ;;  %v2325_v10 = vpop.eup %2324 }
 0x2e7   : > { %v2327_v49 = vpop.eup %2326 }
 0x2e8   : > { %v944_v50 = vpack.c.bf16 %v2327_v49, %v2325_v10  ;;  %v1578_v10 = vadd.s32 24, %v2788_v34 }
 0x2ea   : > { %vm1596_vm5 = vcmp.gt.s32.totalorder %v2790_v35, %v1578_v10 }
 0x2ed   : > { %2155 = vmatmul.mubr.msk.bf16.gmra.mxu1 %vm439_vm0, %v940_v44 }
 0x2ee   : > { %2158 = vmatprep.mubr.msk.bf16.mxu1 %vm439_vm0, %v941_v45 }
 0x2f5   : > { %2159 = vmatmul.mubr.msk.bf16.gmra.mxu1 %vm439_vm0, %v942_v47 }
 0x2f6   : > { %2162 = vmatprep.mubr.msk.bf16.mxu1 %vm439_vm0, %v943_v48 }
 0x2fd   : > { %2163 = vmatmul.mubr.msk.bf16.gmra.mxu1 %vm439_vm0, %v944_v50 }
 0x2ff   : > { %v1117_v52 = vpop.permute.xlu1 %1116 }
 0x301   : > { %v1115_v51 = vpop.permute.xlu0 %1114 }
 0x302   : > { %2118 = vmatprep.mubr.msk.bf16.mxu0 %vm1170_vm1, %v1115_v51 }
 0x303   : > { %2119 = vmatmul.mubr.msk.bf16.vlgmr.msra.gmra.mxu0 %vm1170_vm1, %v1117_v52 }
 0x307   : > { %v1121_v54 = vpop.permute.xlu1 %1120 }
 0x309   : > { %v1119_v53 = vpop.permute.xlu0 %1118 }
 0x30a   : > { %2122 = vmatprep.mubr.msk.bf16.mxu0 %vm1170_vm1, %v1119_v53 }
 0x30b   : > { %2123 = vmatmul.mubr.msk.bf16.gmra.mxu0 %vm1170_vm1, %v1121_v54  ;;  %v1579_v54 = vadd.s32 32, %v2788_v34 }
 0x30d   : > { %vm1597_vm6 = vcmp.gt.s32.totalorder %v2790_v35, %v1579_v54 }
 0x30f   : > { %v1125_v56 = vpop.permute.xlu1 %1124 }
 0x311   : > { %v1123_v55 = vpop.permute.xlu0 %1122 }
 0x312   : > { %2126 = vmatprep.mubr.msk.bf16.mxu0 %vm1170_vm1, %v1123_v55 }
 0x313   : > { %2127 = vmatmul.mubr.msk.bf16.gmra.mxu0 %vm1170_vm1, %v1125_v56 }
 0x317   : > { %v1129_v57 = vpop.permute.xlu1 %1128 }
 0x319   : > { %v1127_v58 = vpop.permute.xlu0 %1126 }
 0x31a   : > { %2130 = vmatprep.mubr.msk.bf16.mxu0 %vm1170_vm1, %v1127_v58 }
 0x31b   : > { %2131 = vmatmul.mubr.msk.bf16.gmra.mxu0 %vm1170_vm1, %v1129_v57 }
 0x3a5   : > { %v2152_v31 = vpop.f32.mrf.mxu1 }
 0x3a7   : > { %v1493_v33 = vpop.f32.mrf.mxu1 }
 0x3a9   : > { %v2153_v36 = vpop.f32.mrf.mxu1 }
 0x3ab   : > { %v1496_v42 = vpop.f32.mrf.mxu1 }
 0x3ad   : > { %v2156_v20 = vpop.f32.mrf.mxu1 }
 0x3af   : > { %v1509_v50 = vpop.f32.mrf.mxu1 }
 0x3b1   : > { %v2157_v56 = vpop.f32.mrf.mxu1 }
 0x3c3   : > { %v2120_v59 = vpop.f32.mrf.mxu0 }
 0x3c4   : > { %1325 = vrot.lane.b32.xlu0 %v2120_v59, %s2455_s13  ;;  %s2467_s13 = smov 344  }
 0x3c5   : > { %v1253_v60 = vpop.f32.mrf.mxu0 }
 0x3c7   : > { %v2121_v61 = vpop.f32.mrf.mxu0 }
 0x3c8   : > { %1317 = vrot.lane.b32.xlu0 %v1253_v60, %s2456_s21  ;;  %s2468_s21 = smov 352   ;;  %v1580_v60 = vadd.s32 40, %v2788_v34 }
 0x3c9   : > { %v1256_v62 = vpop.f32.mrf.mxu0 }
 0x3ca   : > { %1321 = vrot.lane.b32.xlu1 %v1256_v62, %s2457_s22  ;;  %s2469_s22 = smov 360   ;;  %v1512_v62 = vpop.f32.mrf.mxu1  ;;  %vm1598_vm7 = vcmp.gt.s32.totalorder %v2790_v35, %v1580_v60 }
 0x3cb   : > { %v2124_v63 = vpop.f32.mrf.mxu0 }
 0x3cc   : > { %1341 = vrot.lane.b32.xlu0 %v2124_v63, %s2458_s26  ;;  %s2470_s26 = smov 376  }
 0x3cd   : > { %v1269_v0 = vpop.f32.mrf.mxu0 }
 0x3ce   : > { %1329 = vrot.lane.b32.xlu1 %v2121_v61, %s2459_s27  ;;  %s1556_s27 = sld [smem:[#allocation2]] }
 0x3cf   : > { %v2125_v1 = vpop.f32.mrf.mxu0 }
 0x3d0   : > { %1333 = vrot.lane.b32.xlu0 %v1269_v0, %s2460_s28  ;;  %s351_s28 = sand.u32 1, %s2444_s16  }
 0x3d1   : > { %v1272_v2 = vpop.f32.mrf.mxu0 }
 0x3d2   : > { %1337 = vrot.lane.b32.xlu1 %v1272_v2, %s2461_s29  ;;  %v1581_v2 = vadd.s32 48, %v2788_v34  ;;  %s1865_s29 = sshll.u32 %s351_s28, 7 }
 0x3d3   : > { %v2128_v3 = vpop.f32.mrf.mxu0 }
 0x3d4   : > { %1357 = vrot.lane.b32.xlu0 %v2128_v3, %s2462_s30  ;;  %v2792_v38 = vstv %s1556_s27  ;;  %vm1599_vm8 = vcmp.gt.s32.totalorder %v2790_v35, %v1581_v2  ;;  %s2958_s30 = scalar_lea.vmem [#allocation3], %s1865_s29 }
 0x3d5   : > { %v1285_v4 = vpop.f32.mrf.mxu0 }
 0x3d6   : > { %1345 = vrot.lane.b32.xlu1 %v2125_v1, %s2463_s11  ;;  %s1949_s11 = sshll.u32 %s2553_s8, 11 }
 0x3d7   : > { %v2129_v5 = vpop.f32.mrf.mxu0 }
 0x3d8   : > { %1349 = vrot.lane.b32.xlu0 %v1285_v4, %s2464_s12  ;;  %v2160_v4 = vpop.f32.mrf.mxu1  ;;  %s1799_s12 = sshll.u32 %s2958_s30, 4  ;;  %s2996_s12 = int_to_ptr.vmem [resolvable:$true] %s1799_s12 }
 0x3d9   : > { %v1288_v6 = vpop.f32.mrf.mxu0  ;;  %s2392_s8 = scalar_lea.vmem %s2996_s12, 2048 }
 0x3da   : > { %1353 = vrot.lane.b32.xlu1 %v1288_v6, %s2465_s14  ;;  %p2393_p11 = scmp.ne.s32.totalorder %s2996_s12, %s2392_s8 }
 0x3db   : > { %v2132_v7 = vpop.f32.mrf.mxu0 }
 0x3dc   : > { %1373 = vrot.lane.b32.xlu0 %v2132_v7, %s2466_s19  ;;  %p2394_p12 = pnand %p2393_p11, %p2570_p5 }
 0x3dd   : > { %v1301_v8 = vpop.f32.mrf.mxu0 }
 0x3de   : > { %1361 = vrot.lane.b32.xlu1 %v2129_v5, %s2467_s13  ;;  %s2994_s13 = scalar_lea.hbm %s3052_s10, %s1949_s11  ;;  %p2395_p13 = pneg %p2394_p12 }
 0x3df   : > { %v2133_v9 = vpop.f32.mrf.mxu0 }
 0x3e0   : > { %1365 = vrot.lane.b32.xlu0 %v1301_v8, %s2468_s21  ;;  %v1582_v8 = vadd.s32 56, %v2788_v34  ;;  %s3002_s21 = scalar_lea.sflag [#allocation4], %s351_s28 }
 0x3e1   : > { %v1304_v11 = vpop.f32.mrf.mxu0 }
 0x3e2   : > { %1369 = vrot.lane.b32.xlu1 %v1304_v11, %s2469_s22  ;;  %v1525_v11 = vpop.f32.mrf.mxu1  ;;  %vm1600_vm9 = vcmp.gt.s32.totalorder %v2790_v35, %v1582_v8  ;;  %s2471_s22 = smov [#allocation3]  }
 0x3e6   : > { %1377 = vrot.lane.b32.xlu1 %v2133_v9, %s2470_s26  ;;  %s2396_s26 = sshll.u32 %s2471_s22, 4  ;;  %s2397_s26 = int_to_ptr.vmem [resolvable:$false] %s2396_s26 }
 0x3e7   : > { %s2398_s27 = scalar_lea.vmem %s2397_s26, 4096  ;;  %p2399_p0 = scmp.lt.s32.totalorder %s2996_s12, %s2397_s26 }
 0x3e8   : > { %p2400_p1 = scmp.lt.s32.totalorder %s2398_s27, %s2392_s8 }
 0x3ea   : > { %p2401_p2 = por %p2400_p1, %p2399_p0 }
 0x3ec   : > { %p2402_p3 = pnand %p2401_p2, %p2395_p13 }
 0x436   : > { %v1326_v12 = vpop.permute.xlu0 %1325 }
 0x43a   : > { %v1318_v13 = vpop.permute.xlu0 %1317 }
 0x43b   : > { %1379 = vxpose.xlu0.b32.start [1/16] %v1318_v13, 128 }
 0x43c   : > { %v1322_v14 = vpop.permute.xlu1 %1321 }
 0x43e   : > { %v1342_v15 = vpop.permute.xlu0 %1341 }
 0x43f   : > { %1380 = vxpose.xlu0.b32.cont [2/16] %v1322_v14, 128 }
 0x440   : > { %v1330_v16 = vpop.permute.xlu1 %1329 }
 0x442   : > { %v1334_v17 = vpop.permute.xlu0 %1333 }
 0x443   : > { %1381 = vxpose.xlu0.b32.cont [3/16] %v1326_v12, 128 }
 0x444   : > { %v1338_v18 = vpop.permute.xlu1 %1337 }
 0x446   : > { %v1358_v21 = vpop.permute.xlu0 %1357 }
 0x447   : > { %1382 = vxpose.xlu0.b32.cont [4/16] %v1330_v16, 128 }
 0x448   : > { %v1346_v23 = vpop.permute.xlu1 %1345 }
 0x44a   : > { %v1350_v24 = vpop.permute.xlu0 %1349 }
 0x44b   : > { %1383 = vxpose.xlu0.b32.cont [5/16] %v1334_v17, 128  ;;  %v2161_v17 = vpop.f32.mrf.mxu1 }
 0x44c   : > { %v1354_v25 = vpop.permute.xlu1 %1353 }
 0x44e   : > { %v1374_v26 = vpop.permute.xlu0 %1373 }
 0x44f   : > { %1384 = vxpose.xlu0.b32.cont [6/16] %v1338_v18, 128 }
 0x450   : > { %v1362_v27 = vpop.permute.xlu1 %1361 }
 0x452   : > { %v1366_v28 = vpop.permute.xlu0 %1365 }
 0x453   : > { %1385 = vxpose.xlu0.b32.cont [7/16] %v1342_v15, 128  ;;  %v1583_v15 = vadd.s32 64, %v2788_v34 }
 0x454   : > { %v1370_v29 = vpop.permute.xlu1 %1369 }
 0x455   : > { %vm1601_vm10 = vcmp.gt.s32.totalorder %v2790_v35, %v1583_v15 }
 0x457   : > { %1386 = vxpose.xlu0.b32.cont [8/16] %v1346_v23, 128 }
 0x458   : > { %v1378_v30 = vpop.permute.xlu1 %1377 }
 0x45b   : > { %1387 = vxpose.xlu0.b32.cont [9/16] %v1350_v24, 128  ;;  %v1584_v24 = vadd.s32 72, %v2788_v34 }
 0x45d   : > { %vm1602_vm11 = vcmp.gt.s32.totalorder %v2790_v35, %v1584_v24 }
 0x45f   : > { %1388 = vxpose.xlu0.b32.cont [10/16] %v1354_v25, 128 }
 0x463   : > { %1389 = vxpose.xlu0.b32.cont [11/16] %v1358_v21, 128 }
 0x467   : > { %1390 = vxpose.xlu0.b32.cont [12/16] %v1362_v27, 128 }
 0x46b   : > { %1391 = vxpose.xlu0.b32.cont [13/16] %v1366_v28, 128 }
 0x46f   : > { %1392 = vxpose.xlu0.b32.cont [14/16] %v1370_v29, 128 }
 0x473   : > { %1393 = vxpose.xlu0.b32.cont [15/16] %v1374_v26, 128  ;;  %v1528_v26 = vpop.f32.mrf.mxu1 }
 0x475   : > { %v2164_v32 = vpop.f32.mrf.mxu1 }
 0x477   : > { %1394 = vxpose.xlu0.b32.end [16/16] %v1378_v30, 128  ;;  %v1585_v30 = vadd.s32 80, %v2788_v34 }
 0x479   : > { %vm1603_vm12 = vcmp.gt.s32.totalorder %v2790_v35, %v1585_v30 }
 0x4b7   : > { %v1395_v37 = vpop.trf.xlu0 }
 0x4b8   : > { %v1494_v39 = vadd.f32 %v1493_v33, %v1395_v37 }
 0x4ba   : > { %v1558_v41 = vadd.f32 %v2792_v38, %v1494_v39  ;;  %v1586_v39 = vadd.s32 88, %v2788_v34 }
 0x4bb   : > { %v1396_v43 = vpop.trf.xlu0 }
 0x4bc   : > { %v1497_v44 = vadd.f32 %v1496_v42, %v1396_v43  ;;  %v2798_v45 = vsel %vm1593_vm2, -1e+10, %v1558_v41  ;;  %v1541_v41 = vpop.f32.mrf.mxu1  ;;  %vm1604_vm13 = vcmp.gt.s32.totalorder %v2790_v35, %v1586_v39 }
 0x4bd   : > { %1625 = vmax.xlane.f32.xlu1 %v2798_v45 }
 0x4be   : > { %v1559_v19 = vadd.f32 %v2792_v38, %v1497_v44 }
 0x4bf   : > { %v1397_v22 = vpop.trf.xlu0 }
 0x4c0   : > { %v1502_v47 = vadd.f32 %v2152_v31, %v1397_v22  ;;  %v2804_v48 = vsel %vm1594_vm3, -1e+10, %v1559_v19 }
 0x4c1   : > { %1627 = vmax.xlane.f32.xlu1 %v2804_v48 }
 0x4c2   : > { %v1560_v49 = vadd.f32 %v2792_v38, %v1502_v47 }
 0x4c3   : > { %v1398_v51 = vpop.trf.xlu0 }
 0x4c4   : > { %v1505_v52 = vadd.f32 %v2153_v36, %v1398_v51  ;;  %v2810_v53 = vsel %vm1595_vm4, -1e+10, %v1560_v49  ;;  %v1588_v49 = vadd.s32 104, %v2788_v34 }
 0x4c5   : > { %1629 = vmax.xlane.f32.xlu1 %v2810_v53 }
 0x4c6   : > { %v1561_v55 = vadd.f32 %v2792_v38, %v1505_v52  ;;  %vm1606_vm15 = vcmp.gt.s32.totalorder %v2790_v35, %v1588_v49 }
 0x4c7   : > { %v1399_v57 = vpop.trf.xlu0 }
 0x4c8   : > { %v1510_v58 = vadd.f32 %v1509_v50, %v1399_v57  ;;  %v2816_v59 = vsel %vm1596_vm5, -1e+10, %v1561_v55 }
 0x4c9   : > { %1631 = vmax.xlane.f32.xlu1 %v2816_v59 }
 0x4ca   : > { %v1562_v61 = vadd.f32 %v2792_v38, %v1510_v58 }
 0x4cb   : > { %v1400_v63 = vpop.trf.xlu0 }
 0x4cc   : > { %v1513_v0 = vadd.f32 %v1512_v62, %v1400_v63  ;;  %v2822_v1 = vsel %vm1597_vm6, -1e+10, %v1562_v61  ;;  %v1590_v62 = vadd.s32 120, %v2788_v34 }
 0x4cd   : > { %1633 = vmax.xlane.f32.xlu1 %v2822_v1 }
 0x4ce   : > { %v1563_v3 = vadd.f32 %v2792_v38, %v1513_v0  ;;  %vm1608_vm1 = vcmp.gt.s32.totalorder %v2790_v35, %v1590_v62 }
 0x4cf   : > { %v1401_v5 = vpop.trf.xlu0 }
 0x4d0   : > { %v1518_v6 = vadd.f32 %v2156_v20, %v1401_v5  ;;  %v2828_v7 = vsel %vm1598_vm7, -1e+10, %v1563_v3  ;;  %v2165_v20 = vpop.f32.mrf.mxu1 }
 0x4d1   : > { %1635 = vmax.xlane.f32.xlu1 %v2828_v7 }
 0x4d2   : > { %v1564_v9 = vadd.f32 %v2792_v38, %v1518_v6  ;;  %v1544_v51 = vpop.f32.mrf.mxu1 }
 0x4d3   : > { %v1402_v12 = vpop.trf.xlu0 }
 0x4d4   : > { %v1521_v13 = vadd.f32 %v2157_v56, %v1402_v12  ;;  %v2834_v14 = vsel %vm1599_vm8, -1e+10, %v1564_v9  ;;  %v1589_v56 = vadd.s32 112, %v2788_v34 }
 0x4d5   : > { %1637 = vmax.xlane.f32.xlu1 %v2834_v14 }
 0x4d6   : > { %v1565_v16 = vadd.f32 %v2792_v38, %v1521_v13  ;;  %vm1607_vm0 = vcmp.gt.s32.totalorder %v2790_v35, %v1589_v56 }
 0x4d7   : > { %v1403_v18 = vpop.trf.xlu0 }
 0x4d8   : > { %v1526_v21 = vadd.f32 %v1525_v11, %v1403_v18  ;;  %v2840_v23 = vsel %vm1600_vm9, -1e+10, %v1565_v16 }
 0x4d9   : > { %1639 = vmax.xlane.f32.xlu1 %v2840_v23 }
 0x4da   : > { %v1566_v25 = vadd.f32 %v2792_v38, %v1526_v21 }
 0x4db   : > { %v1404_v27 = vpop.trf.xlu0 }
 0x4dc   : > { %v1529_v28 = vadd.f32 %v1528_v26, %v1404_v27  ;;  %v2846_v29 = vsel %vm1601_vm10, -1e+10, %v1566_v25 }
 0x4dd   : > { %1641 = vmax.xlane.f32.xlu1 %v2846_v29 }
 0x4de   : > { %v1567_v31 = vadd.f32 %v2792_v38, %v1529_v28 }
 0x4df   : > { %v1405_v33 = vpop.trf.xlu0 }
 0x4e0   : > { %v1534_v36 = vadd.f32 %v2160_v4, %v1405_v33  ;;  %v2852_v37 = vsel %vm1602_vm11, -1e+10, %v1567_v31 }
 0x4e1   : > { %1643 = vmax.xlane.f32.xlu1 %v2852_v37 }
 0x4e2   : > { %v1568_v40 = vadd.f32 %v2792_v38, %v1534_v36 }
 0x4e3   : > { %v1406_v42 = vpop.trf.xlu0 }
 0x4e4   : > { %v1537_v43 = vadd.f32 %v2161_v17, %v1406_v42  ;;  %v2858_v44 = vsel %vm1603_vm12, -1e+10, %v1568_v40 }
 0x4e5   : > { %1645 = vmax.xlane.f32.xlu1 %v2858_v44 }
 0x4e6   : > { %v1569_v19 = vadd.f32 %v2792_v38, %v1537_v43 }
 0x4e7   : > { %v1407_v22 = vpop.trf.xlu0 }
 0x4e8   : > { %v1542_v47 = vadd.f32 %v1541_v41, %v1407_v22  ;;  %v2864_v10 = vsel %vm1604_vm13, -1e+10, %v1569_v19 }
 0x4e9   : > { %1647 = vmax.xlane.f32.xlu1 %v2864_v10 }
 0x4ea   : > { %v1570_v50 = vadd.f32 %v2792_v38, %v1542_v47 }
 0x4eb   : > { %v1408_v52 = vpop.trf.xlu0 }
 0x4ec   : > { %v1545_v54 = vadd.f32 %v1544_v51, %v1408_v52  ;;  %v2870_v55 = vsel %vm1605_vm14, -1e+10, %v1570_v50 }
 0x4ed   : > { %1649 = vmax.xlane.f32.xlu1 %v2870_v55 }
 0x4ee   : > { %v1571_v57 = vadd.f32 %v2792_v38, %v1545_v54 }
 0x4ef   : > { %v1409_v58 = vpop.trf.xlu0 }
 0x4f0   : > { %v1550_v60 = vadd.f32 %v2164_v32, %v1409_v58  ;;  %v2876_v61 = vsel %vm1606_vm15, -1e+10, %v1571_v57 }
 0x4f1   : > { %1651 = vmax.xlane.f32.xlu1 %v2876_v61 }
 0x4f2   : > { %v1572_v63 = vadd.f32 %v2792_v38, %v1550_v60 }
 0x4f3   : > { %v1410_v0 = vpop.trf.xlu0 }
 0x4f4   : > { %v1553_v2 = vadd.f32 %v2165_v20, %v1410_v0  ;;  %v2882_v3 = vsel %vm1607_vm0, -1e+10, %v1572_v63 }
 0x4f5   : > { %1653 = vmax.xlane.f32.xlu1 %v2882_v3 }
 0x4f6   : > { %v1573_v4 = vadd.f32 %v2792_v38, %v1553_v2 }
 0x4f8   : > { %v2887_v5 = vsel %vm1608_vm1, -1e+10, %v1573_v4 }
 0x4f9   : > { %1655 = vmax.xlane.f32.xlu0 %v2887_v5 }
 0x546   : > { %v1626_v6 = vpop.xlane.xlu1 %1625 }
 0x547   : > { %v1657_v8 = vsub.f32 %v2798_v45, %v1626_v6 }
 0x549   : > { %v1673_v34 = vmul.f32 1.442695, %v1657_v8 }
 0x54a   : > { %v1628_v9 = vpop.xlane.xlu1 %1627 }
 0x54b   : > { %2328 = vpow2.f32 %v1673_v34  ;;  %v1658_v11 = vsub.f32 %v2804_v48, %v1628_v9 }
 0x54d   : > { %v1675_v12 = vmul.f32 1.442695, %v1658_v11 }
 0x54e   : > { %v1630_v13 = vpop.xlane.xlu1 %1629 }
 0x54f   : > { %2330 = vpow2.f32 %v1675_v12  ;;  %v1659_v15 = vsub.f32 %v2810_v53, %v1630_v13 }
 0x551   : > { %v1677_v35 = vmul.f32 1.442695, %v1659_v15 }
 0x552   : > { %v1632_v16 = vpop.xlane.xlu1 %1631 }
 0x553   : > { %2332 = vpow2.f32 %v1677_v35  ;;  %v1660_v38 = vsub.f32 %v2816_v59, %v1632_v16 }
 0x555   : > { %v1679_v17 = vmul.f32 1.442695, %v1660_v38 }
 0x556   : > { %v1634_v18 = vpop.xlane.xlu1 %1633 }
 0x557   : > { %2334 = vpow2.f32 %v1679_v17  ;;  %v1661_v45 = vsub.f32 %v2822_v1, %v1634_v18 }
 0x558   : > { %v2895_v21 = vpop.eup %2328 }
 0x559   : > { %v1681_v24 = vmul.f32 1.442695, %v1661_v45  ;;  %1705 = vadd.xlane.f32.xlu1 %v2895_v21 }
 0x55a   : > { %v1636_v48 = vpop.xlane.xlu1 %1635 }
 0x55b   : > { %2336 = vpow2.f32 %v1681_v24  ;;  %v1662_v25 = vsub.f32 %v2828_v7, %v1636_v48 }
 0x55c   : > { %v2899_v53 = vpop.eup %2330 }
 0x55d   : > { %v1683_v26 = vmul.f32 1.442695, %v1662_v25  ;;  %1707 = vadd.xlane.f32.xlu1 %v2899_v53 }
 0x55e   : > { %v1638_v59 = vpop.xlane.xlu1 %1637 }
 0x55f   : > { %2338 = vpow2.f32 %v1683_v26  ;;  %v1663_v27 = vsub.f32 %v2834_v14, %v1638_v59 }
 0x560   : > { %v2903_v28 = vpop.eup %2332 }
 0x561   : > { %v1685_v1 = vmul.f32 1.442695, %v1663_v27  ;;  %1709 = vadd.xlane.f32.xlu1 %v2903_v28 }
 0x562   : > { %v1640_v30 = vpop.xlane.xlu1 %1639 }
 0x563   : > { %2340 = vpow2.f32 %v1685_v1  ;;  %v1664_v31 = vsub.f32 %v2840_v23, %v1640_v30 }
 0x564   : > { %v2907_v32 = vpop.eup %2334 }
 0x565   : > { %v1687_v7 = vmul.f32 1.442695, %v1664_v31  ;;  %1711 = vadd.xlane.f32.xlu1 %v2907_v32 }
 0x566   : > { %v1642_v33 = vpop.xlane.xlu1 %1641 }
 0x567   : > { %2342 = vpow2.f32 %v1687_v7  ;;  %v1665_v36 = vsub.f32 %v2846_v29, %v1642_v33 }
 0x568   : > { %v2911_v39 = vpop.eup %2336 }
 0x569   : > { %v1689_v14 = vmul.f32 1.442695, %v1665_v36  ;;  %1713 = vadd.xlane.f32.xlu1 %v2911_v39 }
 0x56a   : > { %v1644_v40 = vpop.xlane.xlu1 %1643 }
 0x56b   : > { %2344 = vpow2.f32 %v1689_v14  ;;  %v1666_v41 = vsub.f32 %v2852_v37, %v1644_v40 }
 0x56c   : > { %v2915_v42 = vpop.eup %2338 }
 0x56d   : > { %v1691_v23 = vmul.f32 1.442695, %v1666_v41  ;;  %1715 = vadd.xlane.f32.xlu1 %v2915_v42 }
 0x56e   : > { %v1646_v43 = vpop.xlane.xlu1 %1645 }
 0x56f   : > { %2346 = vpow2.f32 %v1691_v23  ;;  %v1667_v46 = vsub.f32 %v2858_v44, %v1646_v43 }
 0x570   : > { %v2919_v19 = vpop.eup %2340 }
 0x571   : > { %v1693_v29 = vmul.f32 1.442695, %v1667_v46  ;;  %1717 = vadd.xlane.f32.xlu1 %v2919_v19 }
 0x572   : > { %v1648_v20 = vpop.xlane.xlu1 %1647 }
 0x573   : > { %2348 = vpow2.f32 %v1693_v29  ;;  %v1668_v22 = vsub.f32 %v2864_v10, %v1648_v20 }
 0x574   : > { %v2923_v47 = vpop.eup %2342 }
 0x575   : > { %v1695_v37 = vmul.f32 1.442695, %v1668_v22  ;;  %1719 = vadd.xlane.f32.xlu1 %v2923_v47 }
 0x576   : > { %v1650_v49 = vpop.xlane.xlu1 %1649 }
 0x577   : > { %2350 = vpow2.f32 %v1695_v37  ;;  %v1669_v50 = vsub.f32 %v2870_v55, %v1650_v49 }
 0x578   : > { %v2927_v51 = vpop.eup %2344 }
 0x579   : > { %v1697_v44 = vmul.f32 1.442695, %v1669_v50  ;;  %1721 = vadd.xlane.f32.xlu1 %v2927_v51 }
 0x57a   : > { %v1652_v52 = vpop.xlane.xlu1 %1651 }
 0x57b   : > { %2352 = vpow2.f32 %v1697_v44  ;;  %v1670_v54 = vsub.f32 %v2876_v61, %v1652_v52 }
 0x57c   : > { %v2931_v56 = vpop.eup %2346 }
 0x57d   : > { %v1699_v10 = vmul.f32 1.442695, %v1670_v54  ;;  %1723 = vadd.xlane.f32.xlu1 %v2931_v56 }
 0x57e   : > { %v1654_v57 = vpop.xlane.xlu1 %1653 }
 0x57f   : > { %2354 = vpow2.f32 %v1699_v10  ;;  %v1671_v58 = vsub.f32 %v2882_v3, %v1654_v57 }
 0x580   : > { %v2935_v60 = vpop.eup %2348 }
 0x581   : > { %v1701_v55 = vmul.f32 1.442695, %v1671_v58  ;;  %1725 = vadd.xlane.f32.xlu1 %v2935_v60 }
 0x582   : > { %v1656_v62 = vpop.xlane.xlu0 %1655 }
 0x583   : > { %2356 = vpow2.f32 %v1701_v55  ;;  %v1672_v63 = vsub.f32 %v2887_v5, %v1656_v62 }
 0x584   : > { %v2939_v0 = vpop.eup %2350 }
 0x585   : > { %v1703_v61 = vmul.f32 1.442695, %v1672_v63  ;;  %1727 = vadd.xlane.f32.xlu0 %v2939_v0 }
 0x587   : > { %2358 = vpow2.f32 %v1703_v61 }
 0x588   : > { %v2942_v2 = vpop.eup %2352 }
 0x589   : > { %1729 = vadd.xlane.f32.xlu1 %v2942_v2 }
 0x58c   : > { %v2945_v3 = vpop.eup %2354 }
 0x58d   : > { %1731 = vadd.xlane.f32.xlu0 %v2945_v3 }
 0x590   : > { %v2948_v4 = vpop.eup %2356 }
 0x591   : > { %1733 = vadd.xlane.f32.xlu1 %v2948_v4 }
 0x594   : > { %v2951_v5 = vpop.eup %2358 }
 0x595   : > { %1735 = vadd.xlane.f32.xlu0 %v2951_v5 }
 0x5e2   : > { %v1706_v6 = vpop.xlane.xlu1 %1705 }
 0x5e3   : > { %2360 = vrcp.f32 %v1706_v6 }
 0x5e6   : > { %v1708_v8 = vpop.xlane.xlu1 %1707 }
 0x5e7   : > { %2362 = vrcp.f32 %v1708_v8 }
 0x5ea   : > { %v1710_v34 = vpop.xlane.xlu1 %1709 }
 0x5eb   : > { %2364 = vrcp.f32 %v1710_v34 }
 0x5ee   : > { %v1712_v9 = vpop.xlane.xlu1 %1711 }
 0x5ef   : > { %2366 = vrcp.f32 %v1712_v9 }
 0x5f0   : > { %v2361_v11 = vpop.eup %2360 }
 0x5f1   : > { %v1753_v12 = vmul.f32 %v2361_v11, %v2895_v21 }
 0x5f2   : > { %v1714_v13 = vpop.xlane.xlu1 %1713 }
 0x5f3   : > { %1769 = vst [vmem:[%s2958_s30] sm:$0xff] %v1753_v12  ;;  %2368 = vrcp.f32 %v1714_v13 }
 0x5f4   : > { %v2363_v15 = vpop.eup %2362 }
 0x5f5   : > { %v1754_v35 = vmul.f32 %v2363_v15, %v2899_v53 }
 0x5f6   : > { %v1716_v16 = vpop.xlane.xlu1 %1715 }
 0x5f7   : > { %1770 = vst [vmem:[%s2958_s30 + $0x8] sm:$0xff] %v1754_v35  ;;  %2370 = vrcp.f32 %v1716_v16 }
 0x5f8   : > { %v2365_v38 = vpop.eup %2364 }
 0x5f9   : > { %v1755_v17 = vmul.f32 %v2365_v38, %v2903_v28 }
 0x5fa   : > { %v1718_v18 = vpop.xlane.xlu1 %1717 }
 0x5fb   : > { %1771 = vst [vmem:[%s2958_s30 + $0x10] sm:$0xff] %v1755_v17  ;;  %2372 = vrcp.f32 %v1718_v18 }
 0x5fc   : > { %v2367_v45 = vpop.eup %2366 }
 0x5fd   : > { %v1756_v21 = vmul.f32 %v2367_v45, %v2907_v32 }
 0x5fe   : > { %v1720_v24 = vpop.xlane.xlu1 %1719 }
 0x5ff   : > { %1772 = vst [vmem:[%s2958_s30 + $0x18] sm:$0xff] %v1756_v21  ;;  %2374 = vrcp.f32 %v1720_v24 }
 0x600   : > { %v2369_v48 = vpop.eup %2368 }
 0x601   : > { %v1757_v25 = vmul.f32 %v2369_v48, %v2911_v39 }
 0x602   : > { %v1722_v53 = vpop.xlane.xlu1 %1721 }
 0x603   : > { %1773 = vst [vmem:[%s2958_s30 + $0x20] sm:$0xff] %v1757_v25  ;;  %2376 = vrcp.f32 %v1722_v53 }
 0x604   : > { %v2371_v26 = vpop.eup %2370 }
 0x605   : > { %v1758_v59 = vmul.f32 %v2371_v26, %v2915_v42 }
 0x606   : > { %v1724_v27 = vpop.xlane.xlu1 %1723 }
 0x607   : > { %1774 = vst [vmem:[%s2958_s30 + $0x28] sm:$0xff] %v1758_v59  ;;  %2378 = vrcp.f32 %v1724_v27 }
 0x608   : > { %v2373_v28 = vpop.eup %2372 }
 0x609   : > { %v1759_v1 = vmul.f32 %v2373_v28, %v2919_v19 }
 0x60a   : > { %v1726_v30 = vpop.xlane.xlu1 %1725 }
 0x60b   : > { %1775 = vst [vmem:[%s2958_s30 + $0x30] sm:$0xff] %v1759_v1  ;;  %2380 = vrcp.f32 %v1726_v30 }
 0x60c   : > { %v2375_v31 = vpop.eup %2374 }
 0x60d   : > { %v1760_v32 = vmul.f32 %v2375_v31, %v2923_v47 }
 0x60e   : > { %v1728_v7 = vpop.xlane.xlu0 %1727 }
 0x60f   : > { %1776 = vst [vmem:[%s2958_s30 + $0x38] sm:$0xff] %v1760_v32  ;;  %2382 = vrcp.f32 %v1728_v7 }
 0x610   : > { %v2377_v33 = vpop.eup %2376 }
 0x611   : > { %v1761_v36 = vmul.f32 %v2377_v33, %v2927_v51 }
 0x612   : > { %v1730_v39 = vpop.xlane.xlu1 %1729 }
 0x613   : > { %1777 = vst [vmem:[%s2958_s30 + $0x40] sm:$0xff] %v1761_v36  ;;  %2384 = vrcp.f32 %v1730_v39 }
 0x614   : > { %v2379_v14 = vpop.eup %2378 }
 0x615   : > { %v1762_v40 = vmul.f32 %v2379_v14, %v2931_v56 }
 0x616   : > { %v1732_v41 = vpop.xlane.xlu0 %1731 }
 0x617   : > { %1778 = vst [vmem:[%s2958_s30 + $0x48] sm:$0xff] %v1762_v40  ;;  %2386 = vrcp.f32 %v1732_v41 }
 0x618   : > { %v2381_v42 = vpop.eup %2380 }
 0x619   : > { %v1763_v23 = vmul.f32 %v2381_v42, %v2935_v60 }
 0x61a   : > { %v1734_v43 = vpop.xlane.xlu1 %1733 }
 0x61b   : > { %1779 = vst [vmem:[%s2958_s30 + $0x50] sm:$0xff] %v1763_v23  ;;  %2388 = vrcp.f32 %v1734_v43 }
 0x61c   : > { %v2383_v46 = vpop.eup %2382 }
 0x61d   : > { %v1764_v19 = vmul.f32 %v2383_v46, %v2939_v0 }
 0x61e   : > { %v1736_v29 = vpop.xlane.xlu0 %1735 }
 0x61f   : > { %1780 = vst [vmem:[%s2958_s30 + $0x58] sm:$0xff] %v1764_v19  ;;  %2390 = vrcp.f32 %v1736_v29 }
 0x620   : > { %v2385_v20 = vpop.eup %2384 }
 0x621   : > { %v1765_v22 = vmul.f32 %v2385_v20, %v2942_v2 }
 0x623   : > { %1781 = vst [vmem:[%s2958_s30 + $0x60] sm:$0xff] %v1765_v22 }
 0x624   : > { %v2387_v47 = vpop.eup %2386 }
 0x625   : > { %v1766_v37 = vmul.f32 %v2387_v47, %v2945_v3 }
 0x627   : > { %1782 = vst [vmem:[%s2958_s30 + $0x68] sm:$0xff] %v1766_v37 }
 0x628   : > { %v2389_v49 = vpop.eup %2388 }
 0x629   : > { %v1767_v50 = vmul.f32 %v2389_v49, %v2948_v4 }
 0x62b   : > { %1783 = vst [vmem:[%s2958_s30 + $0x70] sm:$0xff] %v1767_v50 }
 0x62c   : > { %v2391_v51 = vpop.eup %2390 }
 0x62d   : > { %v1768_v44 = vmul.f32 %v2391_v51, %v2951_v5 }
 0x62f   : > { %1784 = vst [vmem:[%s2958_s30 + $0x78] sm:$0xff] %v1768_v44 }
 0x630   : > { %2405 = shalt.err (!%p2402_p3)
}
 0x631   : > { %s2406_s28 = scalar_lea.hbm %s2994_s13, 2048  ;;  %s2410_s11 = scalar_lea.hbm %s3052_s10, 4096 }
 0x632   : > { %p2407_p4 = scmp.ne.s32.totalorder %s2994_s13, %s2406_s28  ;;  %p2411_p9 = scmp.lt.s32.totalorder %s2994_s13, %s3052_s10 }
 0x633   : > { %p2412_p10 = scmp.lt.s32.totalorder %s2410_s11, %s2406_s28 }
 0x634   : > { %p2408_p7 = pnand %p2407_p4, %p2570_p5 }
 0x635   : > { %p2413_p11 = por %p2412_p10, %p2411_p9 }
 0x636   : > { %p2409_p8 = pneg %p2408_p7 }
 0x638   : > { %p2414_p12 = pnand %p2413_p11, %p2409_p8 }
 0x63a   : > { %2417 = shalt.err (!%p2414_p12)
}
 0x63b   : > { %s2472_s8 = smov 128   ;;  %s2473_s22 = smov 8  }
 0x63c   : > { %2182 = dma.vmem_to_hbm [thread:$0]  (%p2570_p5), %s2996_s12, 2048, %s2994_s13, %s3002_s21, %s2472_s8, %s2472_s8, %s2473_s22  }
 0x63d PF: > { %p2188_p13 = scmp.ge.s32.totalorder %s2452_s18, 2  ;;  %s1814_s26 = sand.u32 1, %s2440_s15  }
 0x63e   : > { %s1815_s27 = scalar_lea.sflag [#allocation4], %s1814_s26 }
 0x63f   : > { %p2185_p0 = pnand %p2188_p13, %p2574_p6 }
 0x641   : > { %p2186_p1 = pneg %p2185_p0 }
 0x643   : > { %2435 = dma.done.wait (%p2186_p1), %s1815_s27, 2048  }
 0x644   : > { %2437 = vsyncadd (%p2186_p1), %s1815_s27, 4294965248  ;;  %p21_p2 = scmp.ge.s32.totalorder %s2557_s20, 4   ;;  %s3055_s15 = smov %s2444_s16 }
 0x645   : > { %s3056_s16 = smov %s2448_s17  ;;  %s3057_s17 = smov %s2568_s23 }
 0x646   : > { %s3058_s18 = smov %s2557_s20  ;;  %23 = sbr.rel (!%p21_p2) target bundleno = 5 (0x5), region = 95 }
 0x64b   :  { %1820 = vsyncpa [#allocation4], 1 }
 0x64c   :  { %1822 = vsyncpa [#allocation4 + $0x1], 1 }

</bundles_post_ra>
